<compile_context>
chip_gen: v6e
topology: v6e:2x2x1
jax: 0.10.0
libtpu: 0.0.40
codegen_flags: <defaults>
</compile_context>

<pallas_src>
import jax
import jax.numpy as jnp
from jax import lax
from jax.experimental import pallas as pl
from jax.experimental.pallas import tpu as pltpu

D_IN = 28 * 28          # 784 (true input width)
D_IN_PAD = 896          # 7 * 128, lane-aligned K for layer 1
H = 202                 # true hidden width
H_PAD = 256             # padded hidden width (MXU/lane native)
N_CLASSES = 10
O_PAD = 128             # padded output width
N_HIDDEN_SAME = 11      # layers 2..12 share the (202, 202) shape
LAYER_DIMS = [(D_IN, H)] + [(H, H)] * N_HIDDEN_SAME + [(H, N_CLASSES)]


def _round_up(n, m):
    return ((n + m - 1) // m) * m


# ----------------------------- fused kernel ----------------------------------

def _mlp_kernel(x_ref, w1_ref, b1_ref, wh_ref, bh_ref, w13_ref, b13_ref,
                hid_ref, out_ref):
    """One batch-tile through all 13 layers; activations stay in VMEM.

    x_ref   : (TB, 896)            bf16
    w1_ref  : (896, 256)           bf16   b1_ref : (1, 256)     f32
    wh_ref  : (11, 256, 256)       bf16   bh_ref : (11, 1, 256) f32
    w13_ref : (256, 128)           bf16   b13_ref: (1, 128)     f32
    hid_ref : (12, TB, 256)        bf16   (layer1..layer12 outputs)
    out_ref : (TB, 128)            f32    (masked softmax, first 10 lanes valid)
    """
    # ---- layer 1: (TB,896) @ (896,256), f32 accumulation on the MXU ----
    h = (jnp.dot(x_ref[...], w1_ref[...], preferred_element_type=jnp.float32)
         + b1_ref[...])
    hid_ref[0] = jnp.maximum(h, 0.0).astype(jnp.bfloat16)

    # ---- layers 2..12: 11 packed (256,256) matmuls, fully unrolled ----
    # Static leading-axis indices => zero-cost contiguous VMEM views; bouncing
    # through the VMEM-resident output block bounds vreg live ranges per layer.
    for j in range(N_HIDDEN_SAME):
        a = hid_ref[j]                                   # bf16 (TB, 256)
        y = jnp.dot(a, wh_ref[j], preferred_element_type=jnp.float32) + bh_ref[j]
        hid_ref[j + 1] = jnp.maximum(y, 0.0).astype(jnp.bfloat16)

    # ---- layer 13 + softmax over the first N_CLASSES (masked padded lanes) ----
    a = hid_ref[N_HIDDEN_SAME]
    logits = (jnp.dot(a, w13_ref[...], preferred_element_type=jnp.float32)
              + b13_ref[...])
    col = lax.broadcasted_iota(jnp.int32, logits.shape, 1)
    logits = jnp.where(col < N_CLASSES, logits, -jnp.inf)
    m = jnp.max(logits, axis=-1, keepdims=True)
    e = jnp.exp(logits - m)
    s = jnp.sum(e, axis=-1, keepdims=True)
    out_ref[...] = e * pl.reciprocal(s, approx=False)    # exact normalization


# ----------------------------- wrapper ----------------------------------------

def _choose_batch_tile(B):
    """>=2 grid steps when the batch allows it (v7x megacore); cap tile at 512."""
    B8 = _round_up(B, 8)
    if B8 <= 8:
        return 8, 8
    TB = min(512, _round_up(max((B8 + 1) // 2, 16), 16))   # 16-aligned for bf16 tiles
    return TB, _round_up(B8, TB)


def deep_mlp_long_forward(x, packed_params):
    """x: (B, 1, 28, 28) or (B, 784). Returns (out, extract_embedding)."""
    w1, b1, wh, bh, w13, b13 = packed_params

    x_flat = x.reshape(-1, D_IN).astype(jnp.float32)      # == x.view(-1, 784)
    B = x_flat.shape[0]
    TB, B_pad = _choose_batch_tile(B)

    # bf16 input tile, zero-padded in batch (to B_pad) and features (784->896).
    x_p = (jnp.zeros((B_pad, D_IN_PAD), jnp.bfloat16)
           .at[:B, :D_IN].set(x_flat.astype(jnp.bfloat16)))

    flops = 2 * B_pad * (D_IN_PAD * H_PAD
                         + N_HIDDEN_SAME * H_PAD * H_PAD
                         + H_PAD * O_PAD)
    bytes_accessed = (x_p.size * 2 + w1.size * 2 + b1.size * 4 + wh.size * 2
                      + bh.size * 4 + w13.size * 2 + b13.size * 4
                      + 12 * B_pad * H_PAD * 2 + B_pad * O_PAD * 4)

    resident = dict(pipeline_mode=pl.Buffered(1))   # constant index_map => 1 buffer

    hid, final = pl.pallas_call(
        _mlp_kernel,
        out_shape=(
            jax.ShapeDtypeStruct((12, B_pad, H_PAD), jnp.bfloat16),
            jax.ShapeDtypeStruct((B_pad, O_PAD), jnp.float32),
        ),
        grid_spec=pltpu.PrefetchScalarGridSpec(
            num_scalar_prefetch=0,
            grid=(B_pad // TB,),
            in_specs=[
                pl.BlockSpec((TB, D_IN_PAD), lambda i: (i, 0)),               # x tile
                pl.BlockSpec((D_IN_PAD, H_PAD), lambda i: (0, 0), **resident),  # w1
                pl.BlockSpec((1, H_PAD), lambda i: (0, 0), **resident),         # b1
                pl.BlockSpec((N_HIDDEN_SAME, H_PAD, H_PAD),
                             lambda i: (0, 0, 0), **resident),                  # packed W
                pl.BlockSpec((N_HIDDEN_SAME, 1, H_PAD),
                             lambda i: (0, 0, 0), **resident),                  # packed b
                pl.BlockSpec((H_PAD, O_PAD), lambda i: (0, 0), **resident),     # w13
                pl.BlockSpec((1, O_PAD), lambda i: (0, 0), **resident),         # b13
            ],
            out_specs=(
                pl.BlockSpec((12, TB, H_PAD), lambda i: (0, i, 0)),           # embeddings
                pl.BlockSpec((TB, O_PAD), lambda i: (i, 0)),                  # softmax out
            ),
        ),
        compiler_params=pltpu.CompilerParams(
            dimension_semantics=("parallel",),
            vmem_limit_bytes=32 << 20,   # ~10 MiB used at TB=512; safe on v7x too
        ),
        cost_estimate=pl.CostEstimate(
            flops=int(flops),
            transcendentals=int(B_pad * O_PAD),
            bytes_accessed=int(bytes_accessed),
        ),
    )(x_p, w1, b1, wh, bh, w13, b13)

    # Per-layer slices are required by the PyTorch return contract (14 separate
    # tensors); they are bf16 now, so the post-kernel copy traffic is halved.
    # Consumers that can use the stacked tensor directly should index `hid`.
    extract_embedding = [x_flat]
    for layer in range(12):
        extract_embedding.append(hid[layer, :B, :H])
    out = final[:B, :N_CLASSES]
    extract_embedding.append(out)
    return out, extract_embedding


# ----------------------------- parameters -------------------------------------

def init_params(key):
    """PyTorch-like init; weights stored as (in, out) = nn.Linear weight.T."""
    params = []
    for (d_in, d_out) in LAYER_DIMS:
        key, kw, kb = jax.random.split(key, 3)
        bound = 1.0 / jnp.sqrt(jnp.float32(d_in))
        w = jax.random.uniform(kw, (d_in, d_out), jnp.float32, -bound, bound)
        b = jax.random.uniform(kb, (d_out,), jnp.float32, -bound, bound)
        params.append((w, b))
    return params


def pack_params(params):
    """Zero-pad to lane-dense widths, pack the 11 hidden layers, cast W to bf16.

    Padded weight columns AND padded bias lanes are exactly zero, so padded
    activations stay zero through every ReLU layer (do not change that).
    """
    w1 = (jnp.zeros((D_IN_PAD, H_PAD), jnp.float32)
          .at[:D_IN, :H].set(params[0][0]).astype(jnp.bfloat16))
    b1 = jnp.zeros((1, H_PAD), jnp.float32).at[0, :H].set(params[0][1])

    wh = jnp.zeros((N_HIDDEN_SAME, H_PAD, H_PAD), jnp.float32)
    bh = jnp.zeros((N_HIDDEN_SAME, 1, H_PAD), jnp.float32)
    for j in range(N_HIDDEN_SAME):
        w, b = params[1 + j]
        wh = wh.at[j, :H, :H].set(w)
        bh = bh.at[j, 0, :H].set(b)
    wh = wh.astype(jnp.bfloat16)

    w13 = (jnp.zeros((H_PAD, O_PAD), jnp.float32)
           .at[:H, :N_CLASSES].set(params[12][0]).astype(jnp.bfloat16))
    b13 = jnp.zeros((1, O_PAD), jnp.float32).at[0, :N_CLASSES].set(params[12][1])
    return (w1, b1, wh, bh, w13, b13)


# ----------------------------- self-test ---------------------------------------

def _ref_forward(x, params):
    """Plain-JAX reference with matching bf16 weight/activation cast, f32 acc."""
    cur = x.reshape(-1, D_IN).astype(jnp.float32)
    for i in range(12):
        w, b = params[i]
        cur = jnp.maximum(
            jnp.dot(cur.astype(jnp.bfloat16), w.astype(jnp.bfloat16),
                    preferred_element_type=jnp.float32) + b, 0.0)
    w, b = params[12]
    logits = jnp.dot(cur.astype(jnp.bfloat16), w.astype(jnp.bfloat16),
                     preferred_element_type=jnp.float32) + b
    return jax.nn.softmax(logits, axis=-1)


if __name__ == "__main__":
    key = jax.random.PRNGKey(0)
    key, kparams, kx = jax.random.split(key, 3)
    raw_params = init_params(kparams)
    packed = pack_params(raw_params)

    # small MNIST-like batch: NCHW (B=2, C=1, H=28, W=28)
    x = jax.random.normal(kx, (2, 1, 28, 28), jnp.float32)

    fwd = jax.jit(deep_mlp_long_forward)
    out, embeddings = fwd(x, packed)
    out = jax.block_until_ready(out)
    for e in embeddings:
        jax.block_until_ready(e)

    # sanity checks: shapes, softmax normalization, match vs plain-JAX reference
    assert out.shape == (2, 10)
    assert len(embeddings) == 14
    assert embeddings[0].shape == (2, 784)
    assert all(e.shape == (2, 202) for e in embeddings[1:13])
    assert embeddings[13].shape == (2, 10)
    assert jnp.allclose(jnp.sum(out, axis=-1), 1.0, atol=1e-3)
    out_ref = _ref_forward(x, raw_params)
    assert jnp.allclose(out, out_ref, atol=2e-2, rtol=2e-2)
    # embeddings (bf16 by design) vs f32-ish reference: loose check on layer 1
    ref_l1 = jnp.maximum(
        jnp.dot(embeddings[0].astype(jnp.bfloat16),
                raw_params[0][0].astype(jnp.bfloat16),
                preferred_element_type=jnp.float32) + raw_params[0][1], 0.0)
    assert jnp.allclose(embeddings[1].astype(jnp.float32), ref_l1,
                        atol=3e-2, rtol=3e-2)

    print("KERNEL_OK")
</pallas_src>

<mosaic_0001>
module attributes {stable_mosaic.version = 11 : i64} {
  func.func @_mlp_kernel(%arg0: i32, %arg1: memref<8x896xbf16, #tpu.memory_space<vmem>>, %arg2: memref<896x256xbf16, #tpu.memory_space<vmem>>, %arg3: memref<1x256xf32, #tpu.memory_space<vmem>>, %arg4: memref<11x256x256xbf16, #tpu.memory_space<vmem>>, %arg5: memref<11x1x256xf32, #tpu.memory_space<vmem>>, %arg6: memref<256x128xbf16, #tpu.memory_space<vmem>>, %arg7: memref<1x128xf32, #tpu.memory_space<vmem>>, %arg8: memref<12x8x256xbf16, #tpu.memory_space<vmem>>, %arg9: memref<8x128xf32, #tpu.memory_space<vmem>>) attributes {dimension_semantics = [#tpu.dimension_semantics<parallel>], iteration_bounds = array<i64: 1>, scalar_prefetch = 0 : i64, scratch_operands = 0 : i64, tpu.core_type = #tpu.core_type<tc>, window_params = [{transform_indices = @transform_0, window_bounds = array<i64: 8, 896>}, {pipeline_mode = #tpu.pipeline_mode<synchronous>, transform_indices = @transform_1, window_bounds = array<i64: 896, 256>}, {pipeline_mode = #tpu.pipeline_mode<synchronous>, transform_indices = @transform_2, window_bounds = array<i64: 1, 256>}, {pipeline_mode = #tpu.pipeline_mode<synchronous>, transform_indices = @transform_3, window_bounds = array<i64: 11, 256, 256>}, {pipeline_mode = #tpu.pipeline_mode<synchronous>, transform_indices = @transform_4, window_bounds = array<i64: 11, 1, 256>}, {pipeline_mode = #tpu.pipeline_mode<synchronous>, transform_indices = @transform_5, window_bounds = array<i64: 256, 128>}, {pipeline_mode = #tpu.pipeline_mode<synchronous>, transform_indices = @transform_6, window_bounds = array<i64: 1, 128>}, {transform_indices = @transform_7, window_bounds = array<i64: 12, 8, 256>}, {transform_indices = @transform_8, window_bounds = array<i64: 8, 128>}]} {
    %c0 = arith.constant 0 : index
    %c0_0 = arith.constant 0 : index
    %0 = vector.load %arg1[%c0, %c0_0] : memref<8x896xbf16, #tpu.memory_space<vmem>>, vector<8x896xbf16>
    %c0_1 = arith.constant 0 : index
    %c0_2 = arith.constant 0 : index
    %1 = vector.load %arg2[%c0_1, %c0_2] : memref<896x256xbf16, #tpu.memory_space<vmem>>, vector<896x256xbf16>
    %cst = arith.constant dense<0.000000e+00> : vector<8x256xf32>
    %2 = tpu.matmul %0, %1, %cst {dimension_numbers = #tpu.dot_dimension_numbers<[1], [0], [0], [1], [0, 0, 1, 1], [], []>} : vector<8x896xbf16>, vector<896x256xbf16>, vector<8x256xf32> -> vector<8x256xf32>
    %c0_3 = arith.constant 0 : index
    %c0_4 = arith.constant 0 : index
    %3 = vector.load %arg3[%c0_3, %c0_4] : memref<1x256xf32, #tpu.memory_space<vmem>>, vector<1x256xf32>
    %4 = vector.broadcast %3 : vector<1x256xf32> to vector<8x256xf32>
    %5 = arith.addf %2, %4 : vector<8x256xf32>
    %cst_5 = arith.constant 0.000000e+00 : f32
    %6 = vector.broadcast %cst_5 : f32 to vector<8x256xf32>
    %7 = arith.maximumf %5, %6 : vector<8x256xf32>
    %8 = arith.truncf %7 : vector<8x256xf32> to vector<8x256xbf16>
    %c0_6 = arith.constant 0 : index
    %c0_7 = arith.constant 0 : index
    %c0_8 = arith.constant 0 : index
    %9 = vector.load %arg8[%c0_6, %c0_7, %c0_8] : memref<12x8x256xbf16, #tpu.memory_space<vmem>>, vector<1x8x256xbf16>
    %10 = vector.shape_cast %9 : vector<1x8x256xbf16> to vector<8x256xbf16>
    %11 = vector.shape_cast %8 : vector<8x256xbf16> to vector<1x8x256xbf16>
    tpu.vector_store %arg8[%c0_6, %c0_7, %c0_8], %11 {strides = array<i32>} : memref<12x8x256xbf16, #tpu.memory_space<vmem>>, vector<1x8x256xbf16>,
    %c0_9 = arith.constant 0 : index
    %c0_10 = arith.constant 0 : index
    %c0_11 = arith.constant 0 : index
    %12 = vector.load %arg8[%c0_9, %c0_10, %c0_11] : memref<12x8x256xbf16, #tpu.memory_space<vmem>>, vector<1x8x256xbf16>
    %13 = vector.shape_cast %12 : vector<1x8x256xbf16> to vector<8x256xbf16>
    %c0_12 = arith.constant 0 : index
    %c0_13 = arith.constant 0 : index
    %c0_14 = arith.constant 0 : index
    %14 = vector.load %arg4[%c0_12, %c0_13, %c0_14] : memref<11x256x256xbf16, #tpu.memory_space<vmem>>, vector<1x256x256xbf16>
    %15 = vector.shape_cast %14 : vector<1x256x256xbf16> to vector<256x256xbf16>
    %cst_15 = arith.constant dense<0.000000e+00> : vector<8x256xf32>
    %16 = tpu.matmul %13, %15, %cst_15 {dimension_numbers = #tpu.dot_dimension_numbers<[1], [0], [0], [1], [0, 0, 1, 1], [], []>} : vector<8x256xbf16>, vector<256x256xbf16>, vector<8x256xf32> -> vector<8x256xf32>
    %c0_16 = arith.constant 0 : index
    %c0_17 = arith.constant 0 : index
    %c0_18 = arith.constant 0 : index
    %17 = vector.load %arg5[%c0_16, %c0_17, %c0_18] : memref<11x1x256xf32, #tpu.memory_space<vmem>>, vector<1x1x256xf32>
    %18 = vector.shape_cast %17 : vector<1x1x256xf32> to vector<1x256xf32>
    %19 = vector.broadcast %18 : vector<1x256xf32> to vector<8x256xf32>
    %20 = arith.addf %16, %19 : vector<8x256xf32>
    %cst_19 = arith.constant 0.000000e+00 : f32
    %21 = vector.broadcast %cst_19 : f32 to vector<8x256xf32>
    %22 = arith.maximumf %20, %21 : vector<8x256xf32>
    %23 = arith.truncf %22 : vector<8x256xf32> to vector<8x256xbf16>
    %c1 = arith.constant 1 : index
    %c0_20 = arith.constant 0 : index
    %c0_21 = arith.constant 0 : index
    %24 = vector.load %arg8[%c1, %c0_20, %c0_21] : memref<12x8x256xbf16, #tpu.memory_space<vmem>>, vector<1x8x256xbf16>
    %25 = vector.shape_cast %24 : vector<1x8x256xbf16> to vector<8x256xbf16>
    %26 = vector.shape_cast %23 : vector<8x256xbf16> to vector<1x8x256xbf16>
    tpu.vector_store %arg8[%c1, %c0_20, %c0_21], %26 {strides = array<i32>} : memref<12x8x256xbf16, #tpu.memory_space<vmem>>, vector<1x8x256xbf16>,
    %c1_22 = arith.constant 1 : index
    %c0_23 = arith.constant 0 : index
    %c0_24 = arith.constant 0 : index
    %27 = vector.load %arg8[%c1_22, %c0_23, %c0_24] : memref<12x8x256xbf16, #tpu.memory_space<vmem>>, vector<1x8x256xbf16>
    %28 = vector.shape_cast %27 : vector<1x8x256xbf16> to vector<8x256xbf16>
    %c1_25 = arith.constant 1 : index
    %c0_26 = arith.constant 0 : index
    %c0_27 = arith.constant 0 : index
    %29 = vector.load %arg4[%c1_25, %c0_26, %c0_27] : memref<11x256x256xbf16, #tpu.memory_space<vmem>>, vector<1x256x256xbf16>
    %30 = vector.shape_cast %29 : vector<1x256x256xbf16> to vector<256x256xbf16>
    %cst_28 = arith.constant dense<0.000000e+00> : vector<8x256xf32>
    %31 = tpu.matmul %28, %30, %cst_28 {dimension_numbers = #tpu.dot_dimension_numbers<[1], [0], [0], [1], [0, 0, 1, 1], [], []>} : vector<8x256xbf16>, vector<256x256xbf16>, vector<8x256xf32> -> vector<8x256xf32>
    %c1_29 = arith.constant 1 : index
    %c0_30 = arith.constant 0 : index
    %c0_31 = arith.constant 0 : index
    %32 = vector.load %arg5[%c1_29, %c0_30, %c0_31] : memref<11x1x256xf32, #tpu.memory_space<vmem>>, vector<1x1x256xf32>
    %33 = vector.shape_cast %32 : vector<1x1x256xf32> to vector<1x256xf32>
    %34 = vector.broadcast %33 : vector<1x256xf32> to vector<8x256xf32>
    %35 = arith.addf %31, %34 : vector<8x256xf32>
    %cst_32 = arith.constant 0.000000e+00 : f32
    %36 = vector.broadcast %cst_32 : f32 to vector<8x256xf32>
    %37 = arith.maximumf %35, %36 : vector<8x256xf32>
    %38 = arith.truncf %37 : vector<8x256xf32> to vector<8x256xbf16>
    %c2 = arith.constant 2 : index
    %c0_33 = arith.constant 0 : index
    %c0_34 = arith.constant 0 : index
    %39 = vector.load %arg8[%c2, %c0_33, %c0_34] : memref<12x8x256xbf16, #tpu.memory_space<vmem>>, vector<1x8x256xbf16>
    %40 = vector.shape_cast %39 : vector<1x8x256xbf16> to vector<8x256xbf16>
    %41 = vector.shape_cast %38 : vector<8x256xbf16> to vector<1x8x256xbf16>
    tpu.vector_store %arg8[%c2, %c0_33, %c0_34], %41 {strides = array<i32>} : memref<12x8x256xbf16, #tpu.memory_space<vmem>>, vector<1x8x256xbf16>,
    %c2_35 = arith.constant 2 : index
    %c0_36 = arith.constant 0 : index
    %c0_37 = arith.constant 0 : index
    %42 = vector.load %arg8[%c2_35, %c0_36, %c0_37] : memref<12x8x256xbf16, #tpu.memory_space<vmem>>, vector<1x8x256xbf16>
    %43 = vector.shape_cast %42 : vector<1x8x256xbf16> to vector<8x256xbf16>
    %c2_38 = arith.constant 2 : index
    %c0_39 = arith.constant 0 : index
    %c0_40 = arith.constant 0 : index
    %44 = vector.load %arg4[%c2_38, %c0_39, %c0_40] : memref<11x256x256xbf16, #tpu.memory_space<vmem>>, vector<1x256x256xbf16>
    %45 = vector.shape_cast %44 : vector<1x256x256xbf16> to vector<256x256xbf16>
    %cst_41 = arith.constant dense<0.000000e+00> : vector<8x256xf32>
    %46 = tpu.matmul %43, %45, %cst_41 {dimension_numbers = #tpu.dot_dimension_numbers<[1], [0], [0], [1], [0, 0, 1, 1], [], []>} : vector<8x256xbf16>, vector<256x256xbf16>, vector<8x256xf32> -> vector<8x256xf32>
    %c2_42 = arith.constant 2 : index
    %c0_43 = arith.constant 0 : index
    %c0_44 = arith.constant 0 : index
    %47 = vector.load %arg5[%c2_42, %c0_43, %c0_44] : memref<11x1x256xf32, #tpu.memory_space<vmem>>, vector<1x1x256xf32>
    %48 = vector.shape_cast %47 : vector<1x1x256xf32> to vector<1x256xf32>
    %49 = vector.broadcast %48 : vector<1x256xf32> to vector<8x256xf32>
    %50 = arith.addf %46, %49 : vector<8x256xf32>
    %cst_45 = arith.constant 0.000000e+00 : f32
    %51 = vector.broadcast %cst_45 : f32 to vector<8x256xf32>
    %52 = arith.maximumf %50, %51 : vector<8x256xf32>
    %53 = arith.truncf %52 : vector<8x256xf32> to vector<8x256xbf16>
    %c3 = arith.constant 3 : index
    %c0_46 = arith.constant 0 : index
    %c0_47 = arith.constant 0 : index
    %54 = vector.load %arg8[%c3, %c0_46, %c0_47] : memref<12x8x256xbf16, #tpu.memory_space<vmem>>, vector<1x8x256xbf16>
    %55 = vector.shape_cast %54 : vector<1x8x256xbf16> to vector<8x256xbf16>
    %56 = vector.shape_cast %53 : vector<8x256xbf16> to vector<1x8x256xbf16>
    tpu.vector_store %arg8[%c3, %c0_46, %c0_47], %56 {strides = array<i32>} : memref<12x8x256xbf16, #tpu.memory_space<vmem>>, vector<1x8x256xbf16>,
    %c3_48 = arith.constant 3 : index
    %c0_49 = arith.constant 0 : index
    %c0_50 = arith.constant 0 : index
    %57 = vector.load %arg8[%c3_48, %c0_49, %c0_50] : memref<12x8x256xbf16, #tpu.memory_space<vmem>>, vector<1x8x256xbf16>
    %58 = vector.shape_cast %57 : vector<1x8x256xbf16> to vector<8x256xbf16>
    %c3_51 = arith.constant 3 : index
    %c0_52 = arith.constant 0 : index
    %c0_53 = arith.constant 0 : index
    %59 = vector.load %arg4[%c3_51, %c0_52, %c0_53] : memref<11x256x256xbf16, #tpu.memory_space<vmem>>, vector<1x256x256xbf16>
    %60 = vector.shape_cast %59 : vector<1x256x256xbf16> to vector<256x256xbf16>
    %cst_54 = arith.constant dense<0.000000e+00> : vector<8x256xf32>
    %61 = tpu.matmul %58, %60, %cst_54 {dimension_numbers = #tpu.dot_dimension_numbers<[1], [0], [0], [1], [0, 0, 1, 1], [], []>} : vector<8x256xbf16>, vector<256x256xbf16>, vector<8x256xf32> -> vector<8x256xf32>
    %c3_55 = arith.constant 3 : index
    %c0_56 = arith.constant 0 : index
    %c0_57 = arith.constant 0 : index
    %62 = vector.load %arg5[%c3_55, %c0_56, %c0_57] : memref<11x1x256xf32, #tpu.memory_space<vmem>>, vector<1x1x256xf32>
    %63 = vector.shape_cast %62 : vector<1x1x256xf32> to vector<1x256xf32>
    %64 = vector.broadcast %63 : vector<1x256xf32> to vector<8x256xf32>
    %65 = arith.addf %61, %64 : vector<8x256xf32>
    %cst_58 = arith.constant 0.000000e+00 : f32
    %66 = vector.broadcast %cst_58 : f32 to vector<8x256xf32>
    %67 = arith.maximumf %65, %66 : vector<8x256xf32>
    %68 = arith.truncf %67 : vector<8x256xf32> to vector<8x256xbf16>
    %c4 = arith.constant 4 : index
    %c0_59 = arith.constant 0 : index
    %c0_60 = arith.constant 0 : index
    %69 = vector.load %arg8[%c4, %c0_59, %c0_60] : memref<12x8x256xbf16, #tpu.memory_space<vmem>>, vector<1x8x256xbf16>
    %70 = vector.shape_cast %69 : vector<1x8x256xbf16> to vector<8x256xbf16>
    %71 = vector.shape_cast %68 : vector<8x256xbf16> to vector<1x8x256xbf16>
    tpu.vector_store %arg8[%c4, %c0_59, %c0_60], %71 {strides = array<i32>} : memref<12x8x256xbf16, #tpu.memory_space<vmem>>, vector<1x8x256xbf16>,
    %c4_61 = arith.constant 4 : index
    %c0_62 = arith.constant 0 : index
    %c0_63 = arith.constant 0 : index
    %72 = vector.load %arg8[%c4_61, %c0_62, %c0_63] : memref<12x8x256xbf16, #tpu.memory_space<vmem>>, vector<1x8x256xbf16>
    %73 = vector.shape_cast %72 : vector<1x8x256xbf16> to vector<8x256xbf16>
    %c4_64 = arith.constant 4 : index
    %c0_65 = arith.constant 0 : index
    %c0_66 = arith.constant 0 : index
    %74 = vector.load %arg4[%c4_64, %c0_65, %c0_66] : memref<11x256x256xbf16, #tpu.memory_space<vmem>>, vector<1x256x256xbf16>
    %75 = vector.shape_cast %74 : vector<1x256x256xbf16> to vector<256x256xbf16>
    %cst_67 = arith.constant dense<0.000000e+00> : vector<8x256xf32>
    %76 = tpu.matmul %73, %75, %cst_67 {dimension_numbers = #tpu.dot_dimension_numbers<[1], [0], [0], [1], [0, 0, 1, 1], [], []>} : vector<8x256xbf16>, vector<256x256xbf16>, vector<8x256xf32> -> vector<8x256xf32>
    %c4_68 = arith.constant 4 : index
    %c0_69 = arith.constant 0 : index
    %c0_70 = arith.constant 0 : index
    %77 = vector.load %arg5[%c4_68, %c0_69, %c0_70] : memref<11x1x256xf32, #tpu.memory_space<vmem>>, vector<1x1x256xf32>
    %78 = vector.shape_cast %77 : vector<1x1x256xf32> to vector<1x256xf32>
    %79 = vector.broadcast %78 : vector<1x256xf32> to vector<8x256xf32>
    %80 = arith.addf %76, %79 : vector<8x256xf32>
    %cst_71 = arith.constant 0.000000e+00 : f32
    %81 = vector.broadcast %cst_71 : f32 to vector<8x256xf32>
    %82 = arith.maximumf %80, %81 : vector<8x256xf32>
    %83 = arith.truncf %82 : vector<8x256xf32> to vector<8x256xbf16>
    %c5 = arith.constant 5 : index
    %c0_72 = arith.constant 0 : index
    %c0_73 = arith.constant 0 : index
    %84 = vector.load %arg8[%c5, %c0_72, %c0_73] : memref<12x8x256xbf16, #tpu.memory_space<vmem>>, vector<1x8x256xbf16>
    %85 = vector.shape_cast %84 : vector<1x8x256xbf16> to vector<8x256xbf16>
    %86 = vector.shape_cast %83 : vector<8x256xbf16> to vector<1x8x256xbf16>
    tpu.vector_store %arg8[%c5, %c0_72, %c0_73], %86 {strides = array<i32>} : memref<12x8x256xbf16, #tpu.memory_space<vmem>>, vector<1x8x256xbf16>,
    %c5_74 = arith.constant 5 : index
    %c0_75 = arith.constant 0 : index
    %c0_76 = arith.constant 0 : index
    %87 = vector.load %arg8[%c5_74, %c0_75, %c0_76] : memref<12x8x256xbf16, #tpu.memory_space<vmem>>, vector<1x8x256xbf16>
    %88 = vector.shape_cast %87 : vector<1x8x256xbf16> to vector<8x256xbf16>
    %c5_77 = arith.constant 5 : index
    %c0_78 = arith.constant 0 : index
    %c0_79 = arith.constant 0 : index
    %89 = vector.load %arg4[%c5_77, %c0_78, %c0_79] : memref<11x256x256xbf16, #tpu.memory_space<vmem>>, vector<1x256x256xbf16>
    %90 = vector.shape_cast %89 : vector<1x256x256xbf16> to vector<256x256xbf16>
    %cst_80 = arith.constant dense<0.000000e+00> : vector<8x256xf32>
    %91 = tpu.matmul %88, %90, %cst_80 {dimension_numbers = #tpu.dot_dimension_numbers<[1], [0], [0], [1], [0, 0, 1, 1], [], []>} : vector<8x256xbf16>, vector<256x256xbf16>, vector<8x256xf32> -> vector<8x256xf32>
    %c5_81 = arith.constant 5 : index
    %c0_82 = arith.constant 0 : index
    %c0_83 = arith.constant 0 : index
    %92 = vector.load %arg5[%c5_81, %c0_82, %c0_83] : memref<11x1x256xf32, #tpu.memory_space<vmem>>, vector<1x1x256xf32>
    %93 = vector.shape_cast %92 : vector<1x1x256xf32> to vector<1x256xf32>
    %94 = vector.broadcast %93 : vector<1x256xf32> to vector<8x256xf32>
    %95 = arith.addf %91, %94 : vector<8x256xf32>
    %cst_84 = arith.constant 0.000000e+00 : f32
    %96 = vector.broadcast %cst_84 : f32 to vector<8x256xf32>
    %97 = arith.maximumf %95, %96 : vector<8x256xf32>
    %98 = arith.truncf %97 : vector<8x256xf32> to vector<8x256xbf16>
    %c6 = arith.constant 6 : index
    %c0_85 = arith.constant 0 : index
    %c0_86 = arith.constant 0 : index
    %99 = vector.load %arg8[%c6, %c0_85, %c0_86] : memref<12x8x256xbf16, #tpu.memory_space<vmem>>, vector<1x8x256xbf16>
    %100 = vector.shape_cast %99 : vector<1x8x256xbf16> to vector<8x256xbf16>
    %101 = vector.shape_cast %98 : vector<8x256xbf16> to vector<1x8x256xbf16>
    tpu.vector_store %arg8[%c6, %c0_85, %c0_86], %101 {strides = array<i32>} : memref<12x8x256xbf16, #tpu.memory_space<vmem>>, vector<1x8x256xbf16>,
    %c6_87 = arith.constant 6 : index
    %c0_88 = arith.constant 0 : index
    %c0_89 = arith.constant 0 : index
    %102 = vector.load %arg8[%c6_87, %c0_88, %c0_89] : memref<12x8x256xbf16, #tpu.memory_space<vmem>>, vector<1x8x256xbf16>
    %103 = vector.shape_cast %102 : vector<1x8x256xbf16> to vector<8x256xbf16>
    %c6_90 = arith.constant 6 : index
    %c0_91 = arith.constant 0 : index
    %c0_92 = arith.constant 0 : index
    %104 = vector.load %arg4[%c6_90, %c0_91, %c0_92] : memref<11x256x256xbf16, #tpu.memory_space<vmem>>, vector<1x256x256xbf16>
    %105 = vector.shape_cast %104 : vector<1x256x256xbf16> to vector<256x256xbf16>
    %cst_93 = arith.constant dense<0.000000e+00> : vector<8x256xf32>
    %106 = tpu.matmul %103, %105, %cst_93 {dimension_numbers = #tpu.dot_dimension_numbers<[1], [0], [0], [1], [0, 0, 1, 1], [], []>} : vector<8x256xbf16>, vector<256x256xbf16>, vector<8x256xf32> -> vector<8x256xf32>
    %c6_94 = arith.constant 6 : index
    %c0_95 = arith.constant 0 : index
    %c0_96 = arith.constant 0 : index
    %107 = vector.load %arg5[%c6_94, %c0_95, %c0_96] : memref<11x1x256xf32, #tpu.memory_space<vmem>>, vector<1x1x256xf32>
    %108 = vector.shape_cast %107 : vector<1x1x256xf32> to vector<1x256xf32>
    %109 = vector.broadcast %108 : vector<1x256xf32> to vector<8x256xf32>
    %110 = arith.addf %106, %109 : vector<8x256xf32>
    %cst_97 = arith.constant 0.000000e+00 : f32
    %111 = vector.broadcast %cst_97 : f32 to vector<8x256xf32>
    %112 = arith.maximumf %110, %111 : vector<8x256xf32>
    %113 = arith.truncf %112 : vector<8x256xf32> to vector<8x256xbf16>
    %c7 = arith.constant 7 : index
    %c0_98 = arith.constant 0 : index
    %c0_99 = arith.constant 0 : index
    %114 = vector.load %arg8[%c7, %c0_98, %c0_99] : memref<12x8x256xbf16, #tpu.memory_space<vmem>>, vector<1x8x256xbf16>
    %115 = vector.shape_cast %114 : vector<1x8x256xbf16> to vector<8x256xbf16>
    %116 = vector.shape_cast %113 : vector<8x256xbf16> to vector<1x8x256xbf16>
    tpu.vector_store %arg8[%c7, %c0_98, %c0_99], %116 {strides = array<i32>} : memref<12x8x256xbf16, #tpu.memory_space<vmem>>, vector<1x8x256xbf16>,
    %c7_100 = arith.constant 7 : index
    %c0_101 = arith.constant 0 : index
    %c0_102 = arith.constant 0 : index
    %117 = vector.load %arg8[%c7_100, %c0_101, %c0_102] : memref<12x8x256xbf16, #tpu.memory_space<vmem>>, vector<1x8x256xbf16>
    %118 = vector.shape_cast %117 : vector<1x8x256xbf16> to vector<8x256xbf16>
    %c7_103 = arith.constant 7 : index
    %c0_104 = arith.constant 0 : index
    %c0_105 = arith.constant 0 : index
    %119 = vector.load %arg4[%c7_103, %c0_104, %c0_105] : memref<11x256x256xbf16, #tpu.memory_space<vmem>>, vector<1x256x256xbf16>
    %120 = vector.shape_cast %119 : vector<1x256x256xbf16> to vector<256x256xbf16>
    %cst_106 = arith.constant dense<0.000000e+00> : vector<8x256xf32>
    %121 = tpu.matmul %118, %120, %cst_106 {dimension_numbers = #tpu.dot_dimension_numbers<[1], [0], [0], [1], [0, 0, 1, 1], [], []>} : vector<8x256xbf16>, vector<256x256xbf16>, vector<8x256xf32> -> vector<8x256xf32>
    %c7_107 = arith.constant 7 : index
    %c0_108 = arith.constant 0 : index
    %c0_109 = arith.constant 0 : index
    %122 = vector.load %arg5[%c7_107, %c0_108, %c0_109] : memref<11x1x256xf32, #tpu.memory_space<vmem>>, vector<1x1x256xf32>
    %123 = vector.shape_cast %122 : vector<1x1x256xf32> to vector<1x256xf32>
    %124 = vector.broadcast %123 : vector<1x256xf32> to vector<8x256xf32>
    %125 = arith.addf %121, %124 : vector<8x256xf32>
    %cst_110 = arith.constant 0.000000e+00 : f32
    %126 = vector.broadcast %cst_110 : f32 to vector<8x256xf32>
    %127 = arith.maximumf %125, %126 : vector<8x256xf32>
    %128 = arith.truncf %127 : vector<8x256xf32> to vector<8x256xbf16>
    %c8 = arith.constant 8 : index
    %c0_111 = arith.constant 0 : index
    %c0_112 = arith.constant 0 : index
    %129 = vector.load %arg8[%c8, %c0_111, %c0_112] : memref<12x8x256xbf16, #tpu.memory_space<vmem>>, vector<1x8x256xbf16>
    %130 = vector.shape_cast %129 : vector<1x8x256xbf16> to vector<8x256xbf16>
    %131 = vector.shape_cast %128 : vector<8x256xbf16> to vector<1x8x256xbf16>
    tpu.vector_store %arg8[%c8, %c0_111, %c0_112], %131 {strides = array<i32>} : memref<12x8x256xbf16, #tpu.memory_space<vmem>>, vector<1x8x256xbf16>,
    %c8_113 = arith.constant 8 : index
    %c0_114 = arith.constant 0 : index
    %c0_115 = arith.constant 0 : index
    %132 = vector.load %arg8[%c8_113, %c0_114, %c0_115] : memref<12x8x256xbf16, #tpu.memory_space<vmem>>, vector<1x8x256xbf16>
    %133 = vector.shape_cast %132 : vector<1x8x256xbf16> to vector<8x256xbf16>
    %c8_116 = arith.constant 8 : index
    %c0_117 = arith.constant 0 : index
    %c0_118 = arith.constant 0 : index
    %134 = vector.load %arg4[%c8_116, %c0_117, %c0_118] : memref<11x256x256xbf16, #tpu.memory_space<vmem>>, vector<1x256x256xbf16>
    %135 = vector.shape_cast %134 : vector<1x256x256xbf16> to vector<256x256xbf16>
    %cst_119 = arith.constant dense<0.000000e+00> : vector<8x256xf32>
    %136 = tpu.matmul %133, %135, %cst_119 {dimension_numbers = #tpu.dot_dimension_numbers<[1], [0], [0], [1], [0, 0, 1, 1], [], []>} : vector<8x256xbf16>, vector<256x256xbf16>, vector<8x256xf32> -> vector<8x256xf32>
    %c8_120 = arith.constant 8 : index
    %c0_121 = arith.constant 0 : index
    %c0_122 = arith.constant 0 : index
    %137 = vector.load %arg5[%c8_120, %c0_121, %c0_122] : memref<11x1x256xf32, #tpu.memory_space<vmem>>, vector<1x1x256xf32>
    %138 = vector.shape_cast %137 : vector<1x1x256xf32> to vector<1x256xf32>
    %139 = vector.broadcast %138 : vector<1x256xf32> to vector<8x256xf32>
    %140 = arith.addf %136, %139 : vector<8x256xf32>
    %cst_123 = arith.constant 0.000000e+00 : f32
    %141 = vector.broadcast %cst_123 : f32 to vector<8x256xf32>
    %142 = arith.maximumf %140, %141 : vector<8x256xf32>
    %143 = arith.truncf %142 : vector<8x256xf32> to vector<8x256xbf16>
    %c9 = arith.constant 9 : index
    %c0_124 = arith.constant 0 : index
    %c0_125 = arith.constant 0 : index
    %144 = vector.load %arg8[%c9, %c0_124, %c0_125] : memref<12x8x256xbf16, #tpu.memory_space<vmem>>, vector<1x8x256xbf16>
    %145 = vector.shape_cast %144 : vector<1x8x256xbf16> to vector<8x256xbf16>
    %146 = vector.shape_cast %143 : vector<8x256xbf16> to vector<1x8x256xbf16>
    tpu.vector_store %arg8[%c9, %c0_124, %c0_125], %146 {strides = array<i32>} : memref<12x8x256xbf16, #tpu.memory_space<vmem>>, vector<1x8x256xbf16>,
    %c9_126 = arith.constant 9 : index
    %c0_127 = arith.constant 0 : index
    %c0_128 = arith.constant 0 : index
    %147 = vector.load %arg8[%c9_126, %c0_127, %c0_128] : memref<12x8x256xbf16, #tpu.memory_space<vmem>>, vector<1x8x256xbf16>
    %148 = vector.shape_cast %147 : vector<1x8x256xbf16> to vector<8x256xbf16>
    %c9_129 = arith.constant 9 : index
    %c0_130 = arith.constant 0 : index
    %c0_131 = arith.constant 0 : index
    %149 = vector.load %arg4[%c9_129, %c0_130, %c0_131] : memref<11x256x256xbf16, #tpu.memory_space<vmem>>, vector<1x256x256xbf16>
    %150 = vector.shape_cast %149 : vector<1x256x256xbf16> to vector<256x256xbf16>
    %cst_132 = arith.constant dense<0.000000e+00> : vector<8x256xf32>
    %151 = tpu.matmul %148, %150, %cst_132 {dimension_numbers = #tpu.dot_dimension_numbers<[1], [0], [0], [1], [0, 0, 1, 1], [], []>} : vector<8x256xbf16>, vector<256x256xbf16>, vector<8x256xf32> -> vector<8x256xf32>
    %c9_133 = arith.constant 9 : index
    %c0_134 = arith.constant 0 : index
    %c0_135 = arith.constant 0 : index
    %152 = vector.load %arg5[%c9_133, %c0_134, %c0_135] : memref<11x1x256xf32, #tpu.memory_space<vmem>>, vector<1x1x256xf32>
    %153 = vector.shape_cast %152 : vector<1x1x256xf32> to vector<1x256xf32>
    %154 = vector.broadcast %153 : vector<1x256xf32> to vector<8x256xf32>
    %155 = arith.addf %151, %154 : vector<8x256xf32>
    %cst_136 = arith.constant 0.000000e+00 : f32
    %156 = vector.broadcast %cst_136 : f32 to vector<8x256xf32>
    %157 = arith.maximumf %155, %156 : vector<8x256xf32>
    %158 = arith.truncf %157 : vector<8x256xf32> to vector<8x256xbf16>
    %c10 = arith.constant 10 : index
    %c0_137 = arith.constant 0 : index
    %c0_138 = arith.constant 0 : index
    %159 = vector.load %arg8[%c10, %c0_137, %c0_138] : memref<12x8x256xbf16, #tpu.memory_space<vmem>>, vector<1x8x256xbf16>
    %160 = vector.shape_cast %159 : vector<1x8x256xbf16> to vector<8x256xbf16>
    %161 = vector.shape_cast %158 : vector<8x256xbf16> to vector<1x8x256xbf16>
    tpu.vector_store %arg8[%c10, %c0_137, %c0_138], %161 {strides = array<i32>} : memref<12x8x256xbf16, #tpu.memory_space<vmem>>, vector<1x8x256xbf16>,
    %c10_139 = arith.constant 10 : index
    %c0_140 = arith.constant 0 : index
    %c0_141 = arith.constant 0 : index
    %162 = vector.load %arg8[%c10_139, %c0_140, %c0_141] : memref<12x8x256xbf16, #tpu.memory_space<vmem>>, vector<1x8x256xbf16>
    %163 = vector.shape_cast %162 : vector<1x8x256xbf16> to vector<8x256xbf16>
    %c10_142 = arith.constant 10 : index
    %c0_143 = arith.constant 0 : index
    %c0_144 = arith.constant 0 : index
    %164 = vector.load %arg4[%c10_142, %c0_143, %c0_144] : memref<11x256x256xbf16, #tpu.memory_space<vmem>>, vector<1x256x256xbf16>
    %165 = vector.shape_cast %164 : vector<1x256x256xbf16> to vector<256x256xbf16>
    %cst_145 = arith.constant dense<0.000000e+00> : vector<8x256xf32>
    %166 = tpu.matmul %163, %165, %cst_145 {dimension_numbers = #tpu.dot_dimension_numbers<[1], [0], [0], [1], [0, 0, 1, 1], [], []>} : vector<8x256xbf16>, vector<256x256xbf16>, vector<8x256xf32> -> vector<8x256xf32>
    %c10_146 = arith.constant 10 : index
    %c0_147 = arith.constant 0 : index
    %c0_148 = arith.constant 0 : index
    %167 = vector.load %arg5[%c10_146, %c0_147, %c0_148] : memref<11x1x256xf32, #tpu.memory_space<vmem>>, vector<1x1x256xf32>
    %168 = vector.shape_cast %167 : vector<1x1x256xf32> to vector<1x256xf32>
    %169 = vector.broadcast %168 : vector<1x256xf32> to vector<8x256xf32>
    %170 = arith.addf %166, %169 : vector<8x256xf32>
    %cst_149 = arith.constant 0.000000e+00 : f32
    %171 = vector.broadcast %cst_149 : f32 to vector<8x256xf32>
    %172 = arith.maximumf %170, %171 : vector<8x256xf32>
    %173 = arith.truncf %172 : vector<8x256xf32> to vector<8x256xbf16>
    %c11 = arith.constant 11 : index
    %c0_150 = arith.constant 0 : index
    %c0_151 = arith.constant 0 : index
    %174 = vector.load %arg8[%c11, %c0_150, %c0_151] : memref<12x8x256xbf16, #tpu.memory_space<vmem>>, vector<1x8x256xbf16>
    %175 = vector.shape_cast %174 : vector<1x8x256xbf16> to vector<8x256xbf16>
    %176 = vector.shape_cast %173 : vector<8x256xbf16> to vector<1x8x256xbf16>
    tpu.vector_store %arg8[%c11, %c0_150, %c0_151], %176 {strides = array<i32>} : memref<12x8x256xbf16, #tpu.memory_space<vmem>>, vector<1x8x256xbf16>,
    %c11_152 = arith.constant 11 : index
    %c0_153 = arith.constant 0 : index
    %c0_154 = arith.constant 0 : index
    %177 = vector.load %arg8[%c11_152, %c0_153, %c0_154] : memref<12x8x256xbf16, #tpu.memory_space<vmem>>, vector<1x8x256xbf16>
    %178 = vector.shape_cast %177 : vector<1x8x256xbf16> to vector<8x256xbf16>
    %c0_155 = arith.constant 0 : index
    %c0_156 = arith.constant 0 : index
    %179 = vector.load %arg6[%c0_155, %c0_156] : memref<256x128xbf16, #tpu.memory_space<vmem>>, vector<256x128xbf16>
    %cst_157 = arith.constant dense<0.000000e+00> : vector<8x128xf32>
    %180 = tpu.matmul %178, %179, %cst_157 {dimension_numbers = #tpu.dot_dimension_numbers<[1], [0], [0], [1], [0, 0, 1, 1], [], []>} : vector<8x256xbf16>, vector<256x128xbf16>, vector<8x128xf32> -> vector<8x128xf32>
    %c0_158 = arith.constant 0 : index
    %c0_159 = arith.constant 0 : index
    %181 = vector.load %arg7[%c0_158, %c0_159] : memref<1x128xf32, #tpu.memory_space<vmem>>, vector<1x128xf32>
    %182 = vector.broadcast %181 : vector<1x128xf32> to vector<8x128xf32>
    %183 = arith.addf %180, %182 : vector<8x128xf32>
    %184 = tpu.iota {dimensions = array<i32: 1>} : vector<8x128xi32>
    %c10_i32 = arith.constant 10 : i32
    %185 = vector.broadcast %c10_i32 : i32 to vector<8x128xi32>
    %186 = arith.cmpi slt, %184, %185 : vector<8x128xi32>
    %cst_160 = arith.constant 0xFF800000 : f32
    %187 = vector.broadcast %cst_160 : f32 to vector<8x128xf32>
    %188 = arith.select %186, %183, %187 : vector<8x128xi1>, vector<8x128xf32>
    %cst_161 = arith.constant dense<0xFF800000> : vector<8xf32>
    %189 = vector.multi_reduction <maximumf>, %188, %cst_161 [1] : vector<8x128xf32> to vector<8xf32>
    %190 = vector.shape_cast %189 : vector<8xf32> to vector<8x1xf32>
    %191 = vector.broadcast %190 : vector<8x1xf32> to vector<8x128xf32>
    %192 = arith.subf %188, %191 : vector<8x128xf32>
    %193 = math.exp %192 : vector<8x128xf32>
    %cst_162 = arith.constant dense<0.000000e+00> : vector<8xf32>
    %194 = vector.multi_reduction <add>, %193, %cst_162 [1] : vector<8x128xf32> to vector<8xf32>
    %195 = vector.shape_cast %194 : vector<8xf32> to vector<8x1xf32>
    %196 = tpu.reciprocal %195 : vector<8x1xf32> -> vector<8x1xf32>
    %197 = vector.broadcast %196 : vector<8x1xf32> to vector<8x128xf32>
    %198 = arith.mulf %193, %197 : vector<8x128xf32>
    %c0_163 = arith.constant 0 : index
    %c0_164 = arith.constant 0 : index
    %199 = vector.load %arg9[%c0_163, %c0_164] : memref<8x128xf32, #tpu.memory_space<vmem>>, vector<8x128xf32>
    tpu.vector_store %arg9[%c0_163, %c0_164], %198 {strides = array<i32>} : memref<8x128xf32, #tpu.memory_space<vmem>>, vector<8x128xf32>,
    return
  }
  func.func @transform_0(%arg0: i32) -> (i32, i32) {
    %c0_i32 = arith.constant 0 : i32
    %c0_i32_0 = arith.constant 0 : i32
    return %arg0, %c0_i32 : i32, i32
  }
  func.func @transform_1(%arg0: i32) -> (i32, i32) {
    %c0_i32 = arith.constant 0 : i32
    %c0_i32_0 = arith.constant 0 : i32
    %c0_i32_1 = arith.constant 0 : i32
    return %c0_i32, %c0_i32_0 : i32, i32
  }
  func.func @transform_2(%arg0: i32) -> (i32, i32) {
    %c0_i32 = arith.constant 0 : i32
    %c0_i32_0 = arith.constant 0 : i32
    %c0_i32_1 = arith.constant 0 : i32
    return %c0_i32, %c0_i32_0 : i32, i32
  }
  func.func @transform_3(%arg0: i32) -> (i32, i32, i32) {
    %c0_i32 = arith.constant 0 : i32
    %c0_i32_0 = arith.constant 0 : i32
    %c0_i32_1 = arith.constant 0 : i32
    %c0_i32_2 = arith.constant 0 : i32
    return %c0_i32, %c0_i32_0, %c0_i32_1 : i32, i32, i32
  }
  func.func @transform_4(%arg0: i32) -> (i32, i32, i32) {
    %c0_i32 = arith.constant 0 : i32
    %c0_i32_0 = arith.constant 0 : i32
    %c0_i32_1 = arith.constant 0 : i32
    %c0_i32_2 = arith.constant 0 : i32
    return %c0_i32, %c0_i32_0, %c0_i32_1 : i32, i32, i32
  }
  func.func @transform_5(%arg0: i32) -> (i32, i32) {
    %c0_i32 = arith.constant 0 : i32
    %c0_i32_0 = arith.constant 0 : i32
    %c0_i32_1 = arith.constant 0 : i32
    return %c0_i32, %c0_i32_0 : i32, i32
  }
  func.func @transform_6(%arg0: i32) -> (i32, i32) {
    %c0_i32 = arith.constant 0 : i32
    %c0_i32_0 = arith.constant 0 : i32
    %c0_i32_1 = arith.constant 0 : i32
    return %c0_i32, %c0_i32_0 : i32, i32
  }
  func.func @transform_7(%arg0: i32) -> (i32, i32, i32) {
    %c0_i32 = arith.constant 0 : i32
    %c0_i32_0 = arith.constant 0 : i32
    %c0_i32_1 = arith.constant 0 : i32
    return %c0_i32, %arg0, %c0_i32_0 : i32, i32, i32
  }
  func.func @transform_8(%arg0: i32) -> (i32, i32) {
    %c0_i32 = arith.constant 0 : i32
    %c0_i32_0 = arith.constant 0 : i32
    return %arg0, %c0_i32 : i32, i32
  }
}

</mosaic_0001>

<bundles_post_ra>
// kernel: deep_mlp_long_forward.1
= control target key start
LH: loop header
LB: loop body
LE: loop exit
PB: predicated region body
PF: predicated region fallthrough
CT: control target
= control target key end

     0   :  { %14 = vsyncpa [#allocation3], 0  ;;  %s5770_s0 = inlined_call_operand.vmem [shape: bf16[8,896], index: 0, kind: input, shape index: {}]   ;;  %s5771_s1 = inlined_call_operand.hbm [shape: bf16[896,256], index: 1, kind: input, shape index: {}]   ;;  %s5772_s2 = inlined_call_operand.hbm [shape: f32[1,256], index: 2, kind: input, shape index: {}]   ;;  %s5773_s3 = inlined_call_operand.hbm [shape: bf16[11,256,256], index: 3, kind: input, shape index: {}]   ;;  %s5774_s4 = inlined_call_operand.hbm [shape: f32[11,1,256], index: 4, kind: input, shape index: {}]   ;;  %s5775_s5 = inlined_call_operand.hbm [shape: bf16[256,128], index: 5, kind: input, shape index: {}]   ;;  %s5776_s6 = inlined_call_operand.hbm [shape: f32[1,128], index: 6, kind: input, shape index: {}]   ;;  %s5777_s7 = inlined_call_operand.vmem [shape: bf16[12,8,256], index: 7, kind: output, shape index: {0}]   ;;  %s5778_s8 = inlined_call_operand.vmem [shape: f32[8,128], index: 8, kind: output, shape index: {1}]  }
   0x1   :  { %15 = vsyncpa [#allocation5], 0 }
   0x2   :  { %16 = vsyncpa [#allocation8], 0 }
   0x3   :  { %17 = vsyncpa [#allocation11], 0  ;;  %s5607_s27 = smov [#allocation4]   ;;  %s5608_s29 = smov [#allocation7]  }
   0x4   :  { %s38_s28 = sshll.u32 %s5607_s27, 4  ;;  %s59_s30 = sshll.u32 %s5608_s29, 4  ;;  %s39_s28 = int_to_ptr.vmem [resolvable:$true] %s38_s28  ;;  %s60_s30 = int_to_ptr.vmem [resolvable:$true] %s59_s30 }
   0x5   :  { %s5487_s9 = scalar_lea.vmem %s39_s28, 32  ;;  %p5492_p1 = scmp.lt.s32.totalorder %s39_s28, %s39_s28 }
   0x6   :  { %p5488_p0 = scmp.ne.s32.totalorder %s39_s28, %s5487_s9  ;;  %p5493_p2 = scmp.lt.s32.totalorder %s5487_s9, %s5487_s9 }
   0x8   :  { %p5494_p3 = por %p5493_p2, %p5492_p1 }
   0xa   :  { %p5495_p4 = pnand %p5494_p3, %p5488_p0 }
   0xc   :  { %5498 = shalt.err (!%p5495_p4)
}
   0xd   :  { %41 = dma.hbm_to_vmem [thread:$0]  %s5772_s2, 32, %s39_s28, [#allocation5]  }
   0xe   :  { %s5507_s12 = scalar_lea.vmem %s60_s30, 352  ;;  %p5512_p6 = scmp.lt.s32.totalorder %s60_s30, %s60_s30 }
   0xf   :  { %p5508_p5 = scmp.ne.s32.totalorder %s60_s30, %s5507_s12  ;;  %p5513_p7 = scmp.lt.s32.totalorder %s5507_s12, %s5507_s12 }
  0x11   :  { %p5514_p8 = por %p5513_p7, %p5512_p6 }
  0x13   :  { %p5515_p9 = pnand %p5514_p8, %p5508_p5 }
  0x15   :  { %5518 = shalt.err (!%p5515_p9)
}
  0x16   :  { %s5609_s13 = smov 32   ;;  %s5610_s14 = smov 2  }
  0x17   :  { %65 = dma.hbm_to_vmem [thread:$0]  %s5774_s4, 352, %s60_s30, [#allocation8], %s5609_s13, %s5609_s13, %s5610_s14  }
  0x18   :  { %s5611_s17 = smov [#allocation2]  }
  0x19   :  { %s25_s18 = sshll.u32 %s5611_s17, 4  ;;  %s26_s18 = int_to_ptr.vmem [resolvable:$true] %s25_s18 }
  0x1a   :  { %s5527_s19 = scalar_lea.vmem %s26_s18, 14336  ;;  %p5532_p11 = scmp.lt.s32.totalorder %s26_s18, %s26_s18 }
  0x1b   :  { %p5528_p10 = scmp.ne.s32.totalorder %s26_s18, %s5527_s19  ;;  %p5533_p12 = scmp.lt.s32.totalorder %s5527_s19, %s5527_s19 }
  0x1d   :  { %p5534_p13 = por %p5533_p12, %p5532_p11 }
  0x1f   :  { %p5535_p0 = pnand %p5534_p13, %p5528_p10 }
  0x21   :  { %5538 = shalt.err (!%p5535_p0)
}
  0x22   :  { %s5612_s2 = smov 128   ;;  %s5613_s20 = smov 8  }
  0x23   :  { %31 = dma.hbm_to_vmem [thread:$0]  %s5771_s1, 14336, %s26_s18, [#allocation3], %s5612_s2, %s5612_s2, %s5613_s20  }
  0x24   :  { %s5614_s23 = smov [#allocation6]   ;;  %s5615_s4 = smov [#allocation9]  }
  0x25   :  { %s47_s24 = sshll.u32 %s5614_s23, 4  ;;  %s71_s25 = sshll.u32 %s5615_s4, 4  ;;  %s48_s24 = int_to_ptr.vmem [resolvable:$true] %s47_s24  ;;  %s72_s25 = int_to_ptr.vmem [resolvable:$true] %s71_s25 }
  0x26   :  { %s5547_s26 = scalar_lea.vmem %s48_s24, 45056  ;;  %p5552_p2 = scmp.lt.s32.totalorder %s48_s24, %s48_s24 }
  0x27   :  { %p5548_p1 = scmp.ne.s32.totalorder %s48_s24, %s5547_s26  ;;  %p5553_p3 = scmp.lt.s32.totalorder %s5547_s26, %s5547_s26 }
  0x29   :  { %p5554_p4 = por %p5553_p3, %p5552_p2 }
  0x2b   :  { %p5555_p5 = pnand %p5554_p4, %p5548_p1 }
  0x2d   :  { %5558 = shalt.err (!%p5555_p5)
}
  0x2e   :  { %53 = dma.hbm_to_vmem [thread:$0]  %s5773_s3, 45056, %s48_s24, [#allocation5], %s5612_s2, %s5612_s2, %s5613_s20  }
  0x2f   :  { %s5567_s29 = scalar_lea.vmem %s72_s25, 2048  ;;  %p5572_p7 = scmp.lt.s32.totalorder %s72_s25, %s72_s25 }
  0x30   :  { %p5568_p6 = scmp.ne.s32.totalorder %s72_s25, %s5567_s29  ;;  %p5573_p8 = scmp.lt.s32.totalorder %s5567_s29, %s5567_s29 }
  0x32   :  { %p5574_p9 = por %p5573_p8, %p5572_p7 }
  0x34   :  { %p5575_p10 = pnand %p5574_p9, %p5568_p6 }
  0x36   :  { %5578 = shalt.err (!%p5575_p10)
}
  0x37   :  { %s5616_s1 = smov 64   ;;  %s5617_s30 = smov 4  }
  0x38   :  { %77 = dma.hbm_to_vmem [thread:$0]  %s5775_s5, 2048, %s72_s25, [#allocation8], %s5616_s1, %s5616_s1, %s5617_s30  }
  0x39   :  { %s5618_s11 = smov [#allocation10]  }
  0x3a   :  { %s84_s12 = sshll.u32 %s5618_s11, 4  ;;  %s85_s12 = int_to_ptr.vmem [resolvable:$true] %s84_s12 }
  0x3b   :  { %s5587_s13 = scalar_lea.vmem %s85_s12, 16  ;;  %s5591_s3 = scalar_lea.vmem %s85_s12, 32 }
  0x3c   :  { %p5588_p11 = scmp.ne.s32.totalorder %s85_s12, %s5587_s13  ;;  %p5592_p12 = scmp.lt.s32.totalorder %s85_s12, %s85_s12 }
  0x3d   :  { %p5593_p13 = scmp.lt.s32.totalorder %s5591_s3, %s5587_s13 }
  0x3f   :  { %p5594_p0 = por %p5593_p13, %p5592_p12 }
  0x41   :  { %p5595_p1 = pnand %p5594_p0, %p5588_p11 }
  0x43   :  { %5598 = shalt.err (!%p5595_p1)
}
  0x44   :  { %87 = dma.hbm_to_vmem [thread:$0]  %s5776_s6, 16, %s85_s12, [#allocation11]  }
  0x45   :  { %5599 = dma.done.wait [#allocation3], 14336  }
  0x46   :  { %5600 = vsyncadd [#allocation3], 4294952960 }
  0x47   :  { %5601 = dma.done.wait [#allocation5], 45088  }
  0x48   :  { %5602 = vsyncadd [#allocation5], 4294922208 }
  0x49   :  { %5603 = dma.done.wait [#allocation8], 2400  }
  0x4a   :  { %5604 = vsyncadd [#allocation8], 4294964896 }
  0x4b   :  { %5605 = dma.done.wait [#allocation11], 16  }
  0x4c   :  { %5606 = vsyncadd [#allocation11], 4294967280  ;;  %v4732_v0 = vld [vmem:[#allocation2 + $0x74] ss:$8 sps:$4 sm:$0xff]   ;;  %v4734_v1 = vld [vmem:[#allocation2 + $0x70] ss:$8 sps:$4 sm:$0xff]  }
  0x4d   :  { %820 = vmatprep.subr.bf16.mxu0 %v4732_v0  ;;  %v4735_v2 = vld [vmem:[#allocation2 + $0x174] ss:$8 sps:$4 sm:$0xff]   ;;  %v4737_v3 = vld [vmem:[#allocation2 + $0x170] ss:$8 sps:$4 sm:$0xff]   ;;  %v4738_v4 = vld [vmem:[#allocation2 + $0x64] ss:$8 sps:$4 sm:$0xff]  }
  0x4e   :  { %821 = vmatpush1.bf16.msra.mxu0 %v4734_v1  ;;  %v4740_v5 = vld [vmem:[#allocation2 + $0x60] ss:$8 sps:$4 sm:$0xff]   ;;  %861 = vmatprep.subr.bf16.mxu1 %v4735_v2  ;;  %v4741_v6 = vld [vmem:[#allocation2 + $0x164] ss:$8 sps:$4 sm:$0xff]   ;;  %v4744_v8 = vld [vmem:[#allocation2 + $0x54] ss:$8 sps:$4 sm:$0xff]  }
  0x4f   :  { %862 = vmatpush1.bf16.msra.mxu1 %v4737_v3  ;;  %822 = vmatprep.subr.bf16.mxu0 %v4738_v4  ;;  %v4743_v7 = vld [vmem:[#allocation2 + $0x160] ss:$8 sps:$4 sm:$0xff]   ;;  %v4746_v9 = vld [vmem:[#allocation2 + $0x50] ss:$8 sps:$4 sm:$0xff]   ;;  %v4747_v10 = vld [vmem:[#allocation2 + $0x154] ss:$8 sps:$4 sm:$0xff]  }
  0x50   :  { %863 = vmatprep.subr.bf16.mxu1 %v4741_v6  ;;  %v4750_v11 = vld [vmem:[#allocation2 + $0x44] ss:$8 sps:$4 sm:$0xff]   ;;  %v4749_v12 = vld [vmem:[#allocation2 + $0x150] ss:$8 sps:$4 sm:$0xff]   ;;  %v4752_v14 = vld [vmem:[#allocation2 + $0x40] ss:$8 sps:$4 sm:$0xff]  }
  0x51   :  { %v4753_v13 = vld [vmem:[#allocation2 + $0x144] ss:$8 sps:$4 sm:$0xff]   ;;  %v4756_v15 = vld [vmem:[#allocation2 + $0x34] ss:$8 sps:$4 sm:$0xff]   ;;  %v4755_v16 = vld [vmem:[#allocation2 + $0x140] ss:$8 sps:$4 sm:$0xff]  }
  0x52   :  { %823 = vmatpush1.bf16.msra.mxu0 %v4740_v5  ;;  %v4759_v17 = vld [vmem:[#allocation2 + $0x134] ss:$8 sps:$4 sm:$0xff]   ;;  %v4758_v18 = vld [vmem:[#allocation2 + $0x30] ss:$8 sps:$4 sm:$0xff]   ;;  %v4762_v19 = vld [vmem:[#allocation2 + $0x24] ss:$8 sps:$4 sm:$0xff]  }
  0x53   :  { %824 = vmatprep.subr.bf16.mxu0 %v4744_v8  ;;  %864 = vmatpush1.bf16.msra.mxu1 %v4743_v7  ;;  %v4761_v20 = vld [vmem:[#allocation2 + $0x130] ss:$8 sps:$4 sm:$0xff]   ;;  %v4765_v21 = vld [vmem:[#allocation2 + $0x124] ss:$8 sps:$4 sm:$0xff]   ;;  %v4764_v22 = vld [vmem:[#allocation2 + $0x20] ss:$8 sps:$4 sm:$0xff]  }
  0x54   :  { %865 = vmatprep.subr.bf16.mxu1 %v4747_v10  ;;  %v4768_v23 = vld [vmem:[#allocation2 + $0x14] ss:$8 sps:$4 sm:$0xff]   ;;  %v4767_v24 = vld [vmem:[#allocation2 + $0x120] ss:$8 sps:$4 sm:$0xff]   ;;  %v4770_v26 = vld [vmem:[#allocation2 + $0x10] ss:$8 sps:$4 sm:$0xff]  }
  0x55   :  { %v4771_v25 = vld [vmem:[#allocation2 + $0x114] ss:$8 sps:$4 sm:$0xff]   ;;  %v4774_v27 = vld [vmem:[#allocation2 + $0x4] ss:$8 sps:$4 sm:$0xff]   ;;  %v4773_v28 = vld [vmem:[#allocation2 + $0x110] ss:$8 sps:$4 sm:$0xff]  }
  0x56   :  { %825 = vmatpush1.bf16.msra.mxu0 %v4746_v9  ;;  %v4777_v29 = vld [vmem:[#allocation2 + $0x104] ss:$8 sps:$4 sm:$0xff]   ;;  %v4776_v30 = vld [vmem:[#allocation2] ss:$8 sps:$4 sm:$0xff]   ;;  %v4780_v31 = vld [vmem:[#allocation2 + $0xf4] ss:$8 sps:$4 sm:$0xff]  }
  0x57   :  { %826 = vmatprep.subr.bf16.mxu0 %v4750_v11  ;;  %866 = vmatpush1.bf16.msra.mxu1 %v4749_v12  ;;  %v4779_v32 = vld [vmem:[#allocation2 + $0x100] ss:$8 sps:$4 sm:$0xff]   ;;  %v4783_v33 = vld [vmem:[#allocation2 + $0x1f4] ss:$8 sps:$4 sm:$0xff]   ;;  %v4782_v34 = vld [vmem:[#allocation2 + $0xf0] ss:$8 sps:$4 sm:$0xff]  }
  0x58   :  { %867 = vmatprep.subr.bf16.mxu1 %v4753_v13  ;;  %v4786_v35 = vld [vmem:[#allocation2 + $0xe4] ss:$8 sps:$4 sm:$0xff]   ;;  %v4785_v36 = vld [vmem:[#allocation2 + $0x1f0] ss:$8 sps:$4 sm:$0xff]   ;;  %v4788_v38 = vld [vmem:[#allocation2 + $0xe0] ss:$8 sps:$4 sm:$0xff]  }
  0x59   :  { %v4789_v37 = vld [vmem:[#allocation2 + $0x1e4] ss:$8 sps:$4 sm:$0xff]   ;;  %v4792_v39 = vld [vmem:[#allocation2 + $0xd4] ss:$8 sps:$4 sm:$0xff]   ;;  %v4791_v40 = vld [vmem:[#allocation2 + $0x1e0] ss:$8 sps:$4 sm:$0xff]  }
  0x5a   :  { %827 = vmatpush1.bf16.msra.mxu0 %v4752_v14  ;;  %v4795_v41 = vld [vmem:[#allocation2 + $0x1d4] ss:$8 sps:$4 sm:$0xff]   ;;  %v4794_v42 = vld [vmem:[#allocation2 + $0xd0] ss:$8 sps:$4 sm:$0xff]   ;;  %v4798_v43 = vld [vmem:[#allocation2 + $0xc4] ss:$8 sps:$4 sm:$0xff]  }
  0x5b   :  { %828 = vmatprep.subr.bf16.mxu0 %v4756_v15  ;;  %868 = vmatpush1.bf16.msra.mxu1 %v4755_v16  ;;  %v4797_v44 = vld [vmem:[#allocation2 + $0x1d0] ss:$8 sps:$4 sm:$0xff]   ;;  %v4801_v45 = vld [vmem:[#allocation2 + $0x1c4] ss:$8 sps:$4 sm:$0xff]   ;;  %v4800_v47 = vld [vmem:[#allocation2 + $0xc0] ss:$8 sps:$4 sm:$0xff]  }
  0x5c   :  { %869 = vmatprep.subr.bf16.mxu1 %v4759_v17  ;;  %v107_v46 = vld [vmem:[%s5770_s0] sm:$0xff]  ;;  %v4804_v49 = vld [vmem:[#allocation2 + $0xb4] ss:$8 sps:$4 sm:$0xff]   ;;  %v108_v50 = vld [vmem:[%s5770_s0 + $0x8] sm:$0xff]  ;;  %v5619_v15 = vmov 0  }
  0x5d   :  { %v4140_v48 = vcombine.high %v107_v46, %v107_v46  ;;  %v4803_v51 = vld [vmem:[#allocation2 + $0x1c0] ss:$8 sps:$4 sm:$0xff]   ;;  %v4142_v52 = vcombine.high %v108_v50, %v108_v50  ;;  %v4807_v53 = vld [vmem:[#allocation2 + $0x1b4] ss:$8 sps:$4 sm:$0xff]   ;;  %v4806_v54 = vld [vmem:[#allocation2 + $0xb0] ss:$8 sps:$4 sm:$0xff]   ;;  %v4139_v5 = vcombine.low %v107_v46, %v107_v46  ;;  %v4141_v8 = vcombine.low %v108_v50, %v108_v50 }
  0x5e   :  { %829 = vmatpush1.bf16.msra.mxu0 %v4758_v18  ;;  %v4810_v55 = vld [vmem:[#allocation2 + $0xa4] ss:$8 sps:$4 sm:$0xff]   ;;  %v4809_v56 = vld [vmem:[#allocation2 + $0x1b0] ss:$8 sps:$4 sm:$0xff]   ;;  %v4812_v58 = vld [vmem:[#allocation2 + $0xa0] ss:$8 sps:$4 sm:$0xff]  }
  0x5f   :  { %830 = vmatprep.subr.bf16.mxu0 %v4762_v19  ;;  %870 = vmatpush1.bf16.msra.mxu1 %v4761_v20  ;;  %v4813_v57 = vld [vmem:[#allocation2 + $0x1a4] ss:$8 sps:$4 sm:$0xff]   ;;  %v4816_v59 = vld [vmem:[#allocation2 + $0x94] ss:$8 sps:$4 sm:$0xff]   ;;  %v4815_v60 = vld [vmem:[#allocation2 + $0x1a0] ss:$8 sps:$4 sm:$0xff]  }
  0x60   :  { %871 = vmatprep.subr.bf16.mxu1 %v4765_v21  ;;  %852 = vmatprep.mubr.bf16.mxu0 %v4140_v48  ;;  %v4819_v61 = vld [vmem:[#allocation2 + $0x194] ss:$8 sps:$4 sm:$0xff]   ;;  %v4818_v62 = vld [vmem:[#allocation2 + $0x90] ss:$8 sps:$4 sm:$0xff]   ;;  %v4822_v63 = vld [vmem:[#allocation2 + $0x84] ss:$8 sps:$4 sm:$0xff]  }
  0x61   :  { %893 = vmatprep.mubr.bf16.mxu1 %v4142_v52  ;;  %v4821_v0 = vld [vmem:[#allocation2 + $0x190] ss:$8 sps:$4 sm:$0xff]   ;;  %v4825_v1 = vld [vmem:[#allocation2 + $0x184] ss:$8 sps:$4 sm:$0xff]   ;;  %v4824_v2 = vld [vmem:[#allocation2 + $0x80] ss:$8 sps:$4 sm:$0xff]  }
  0x62   :  { %831 = vmatpush1.bf16.msra.mxu0 %v4764_v22  ;;  %v4832_v3 = vld [vmem:[#allocation2 + $0x274] ss:$8 sps:$4 sm:$0xff]   ;;  %v4829_v4 = vld [vmem:[#allocation2 + $0x180] ss:$8 sps:$4 sm:$0xff]   ;;  %v4830_v7 = vld [vmem:[#allocation2 + $0x270] ss:$8 sps:$4 sm:$0xff]  }
  0x63   :  { %832 = vmatprep.subr.bf16.mxu0 %v4768_v23  ;;  %872 = vmatpush1.bf16.msra.mxu1 %v4767_v24  ;;  %v4858_v6 = vld [vmem:[#allocation2 + $0x374] ss:$8 sps:$4 sm:$0xff]   ;;  %v4837_v9 = vld [vmem:[#allocation2 + $0x264] ss:$8 sps:$4 sm:$0xff]   ;;  %v4856_v10 = vld [vmem:[#allocation2 + $0x370] ss:$8 sps:$4 sm:$0xff]  }
  0x64   :  { %873 = vmatprep.subr.bf16.mxu1 %v4771_v25  ;;  %v4864_v11 = vld [vmem:[#allocation2 + $0x364] ss:$8 sps:$4 sm:$0xff]   ;;  %v4835_v12 = vld [vmem:[#allocation2 + $0x260] ss:$8 sps:$4 sm:$0xff]   ;;  %v4840_v13 = vld [vmem:[#allocation2 + $0x254] ss:$8 sps:$4 sm:$0xff]  }
  0x65   :  { %v4862_v14 = vld [vmem:[#allocation2 + $0x360] ss:$8 sps:$4 sm:$0xff]   ;;  %v4870_v16 = vld [vmem:[#allocation2 + $0x354] ss:$8 sps:$4 sm:$0xff]   ;;  %v4838_v17 = vld [vmem:[#allocation2 + $0x250] ss:$8 sps:$4 sm:$0xff]  }
  0x66   :  { %833 = vmatpush1.bf16.msra.mxu0 %v4770_v26  ;;  %v4843_v18 = vld [vmem:[#allocation2 + $0x244] ss:$8 sps:$4 sm:$0xff]   ;;  %v4841_v19 = vld [vmem:[#allocation2 + $0x240] ss:$8 sps:$4 sm:$0xff]   ;;  %v4868_v20 = vld [vmem:[#allocation2 + $0x350] ss:$8 sps:$4 sm:$0xff]  }
  0x67   :  { %834 = vmatprep.subr.bf16.mxu0 %v4774_v27  ;;  %874 = vmatpush1.bf16.msra.mxu1 %v4773_v28  ;;  %v4876_v21 = vld [vmem:[#allocation2 + $0x344] ss:$8 sps:$4 sm:$0xff]   ;;  %v4846_v22 = vld [vmem:[#allocation2 + $0x234] ss:$8 sps:$4 sm:$0xff]   ;;  %v4874_v23 = vld [vmem:[#allocation2 + $0x340] ss:$8 sps:$4 sm:$0xff]  }
  0x68   :  { %875 = vmatprep.subr.bf16.mxu1 %v4777_v29  ;;  %v4882_v24 = vld [vmem:[#allocation2 + $0x334] ss:$8 sps:$4 sm:$0xff]   ;;  %v4844_v26 = vld [vmem:[#allocation2 + $0x230] ss:$8 sps:$4 sm:$0xff]   ;;  %v4849_v28 = vld [vmem:[#allocation2 + $0x224] ss:$8 sps:$4 sm:$0xff]  }
  0x69   :  { %v5692_v25 = vld [vmem:[%s5770_s0 + $0x10] sm:$0xff]  ;;  %v4879_v48 = vld [vmem:[#allocation2 + $0x2c4] ss:$8 sps:$4 sm:$0xff]  }
  0x6a   :  { %835 = vmatpush1.bf16.msra.mxu0 %v4776_v30  ;;  %v4144_v27 = vcombine.high %v5692_v25, %v5692_v25  ;;  %v4880_v29 = vld [vmem:[#allocation2 + $0x330] ss:$8 sps:$4 sm:$0xff]   ;;  %v4888_v30 = vld [vmem:[#allocation2 + $0x324] ss:$8 sps:$4 sm:$0xff]   ;;  %v4873_v46 = vld [vmem:[#allocation2 + $0x2d4] ss:$8 sps:$4 sm:$0xff]  }
  0x6b   :  { %836 = vmatprep.subr.bf16.mxu0 %v4780_v31  ;;  %876 = vmatpush1.bf16.msra.mxu1 %v4779_v32  ;;  %v4847_v31 = vld [vmem:[#allocation2 + $0x220] ss:$8 sps:$4 sm:$0xff]   ;;  %v4852_v32 = vld [vmem:[#allocation2 + $0x214] ss:$8 sps:$4 sm:$0xff]   ;;  %v4891_v52 = vld [vmem:[#allocation2 + $0x2a4] ss:$8 sps:$4 sm:$0xff]  }
  0x6c   :  { %877 = vmatprep.subr.bf16.mxu1 %v4783_v33  ;;  %v4886_v33 = vld [vmem:[#allocation2 + $0x320] ss:$8 sps:$4 sm:$0xff]   ;;  %v4885_v50 = vld [vmem:[#allocation2 + $0x2b4] ss:$8 sps:$4 sm:$0xff]  }
  0x6e   :  { %837 = vmatpush2.bf16.msra.mxu0 %v4782_v34  ;;  %v4894_v34 = vld [vmem:[#allocation2 + $0x314] ss:$8 sps:$4 sm:$0xff]  }
  0x6f   :  { %838 = vmatprep.subr.bf16.mxu0 %v4786_v35  ;;  %878 = vmatpush2.bf16.msra.mxu1 %v4785_v36  ;;  %v4850_v35 = vld [vmem:[#allocation2 + $0x210] ss:$8 sps:$4 sm:$0xff]   ;;  %v4855_v36 = vld [vmem:[#allocation2 + $0x204] ss:$8 sps:$4 sm:$0xff]  }
  0x70   :  { %879 = vmatprep.subr.bf16.mxu1 %v4789_v37  ;;  %v4892_v37 = vld [vmem:[#allocation2 + $0x310] ss:$8 sps:$4 sm:$0xff]  }
  0x72   :  { %839 = vmatpush2.bf16.msra.mxu0 %v4788_v38  ;;  %v4900_v38 = vld [vmem:[#allocation2 + $0x304] ss:$8 sps:$4 sm:$0xff]  }
  0x73   :  { %840 = vmatprep.subr.bf16.mxu0 %v4792_v39  ;;  %880 = vmatpush2.bf16.msra.mxu1 %v4791_v40  ;;  %v4853_v39 = vld [vmem:[#allocation2 + $0x200] ss:$8 sps:$4 sm:$0xff]   ;;  %v4861_v40 = vld [vmem:[#allocation2 + $0x2f4] ss:$8 sps:$4 sm:$0xff]  }
  0x74   :  { %881 = vmatprep.subr.bf16.mxu1 %v4795_v41  ;;  %v4898_v41 = vld [vmem:[#allocation2 + $0x300] ss:$8 sps:$4 sm:$0xff]  }
  0x76   :  { %841 = vmatpush2.bf16.msra.mxu0 %v4794_v42  ;;  %v4859_v42 = vld [vmem:[#allocation2 + $0x2f0] ss:$8 sps:$4 sm:$0xff]  }
  0x77   :  { %842 = vmatprep.subr.bf16.mxu0 %v4798_v43  ;;  %882 = vmatpush2.bf16.msra.mxu1 %v4797_v44  ;;  %v4867_v43 = vld [vmem:[#allocation2 + $0x2e4] ss:$8 sps:$4 sm:$0xff]   ;;  %v4904_v44 = vld [vmem:[%s5770_s0 + $0x18] ss:$0 sps:$4 sm:$0xff]  }
  0x78   :  { %883 = vmatprep.subr.bf16.mxu1 %v4801_v45  ;;  %v4865_v45 = vld [vmem:[#allocation2 + $0x2e0] ss:$8 sps:$4 sm:$0xff]  }
  0x7a   :  { %843 = vmatpush2.bf16.msra.mxu0 %v4800_v47  ;;  %v4871_v47 = vld [vmem:[#allocation2 + $0x2d0] ss:$8 sps:$4 sm:$0xff]  }
  0x7b   :  { %844 = vmatprep.subr.bf16.mxu0 %v4804_v49  ;;  %884 = vmatpush2.bf16.msra.mxu1 %v4803_v51  ;;  %v4877_v49 = vld [vmem:[#allocation2 + $0x2c0] ss:$8 sps:$4 sm:$0xff]   ;;  %v4883_v51 = vld [vmem:[#allocation2 + $0x2b0] ss:$8 sps:$4 sm:$0xff]  }
  0x7c   :  { %885 = vmatprep.subr.bf16.mxu1 %v4807_v53  ;;  %v4889_v53 = vld [vmem:[#allocation2 + $0x2a0] ss:$8 sps:$4 sm:$0xff]  }
  0x7e   :  { %845 = vmatpush2.bf16.msra.mxu0 %v4806_v54  ;;  %v4897_v54 = vld [vmem:[#allocation2 + $0x294] ss:$8 sps:$4 sm:$0xff]  }
  0x7f   :  { %846 = vmatprep.subr.bf16.mxu0 %v4810_v55  ;;  %886 = vmatpush2.bf16.msra.mxu1 %v4809_v56  ;;  %v4895_v55 = vld [vmem:[#allocation2 + $0x290] ss:$8 sps:$4 sm:$0xff]   ;;  %v4903_v56 = vld [vmem:[#allocation2 + $0x284] ss:$8 sps:$4 sm:$0xff]  }
  0x80   :  { %887 = vmatprep.subr.bf16.mxu1 %v4813_v57  ;;  %v4901_v57 = vld [vmem:[#allocation2 + $0x280] ss:$8 sps:$4 sm:$0xff]  }
  0x82   :  { %847 = vmatpush2.bf16.msra.mxu0 %v4812_v58  ;;  %v4143_v58 = vcombine.low %v5692_v25, %v5692_v25  ;;  %v4954_v25 = vld [vmem:[#allocation6 + $0x84] ss:$8 sps:$4 sm:$0xff]  }
  0x83   :  { %848 = vmatprep.subr.bf16.mxu0 %v4816_v59  ;;  %888 = vmatpush2.bf16.msra.mxu1 %v4815_v60  ;;  %v4907_v59 = vld [vmem:[#allocation6 + $0x70] ss:$8 sps:$4 sm:$0xff]   ;;  %v4909_v60 = vld [vmem:[#allocation6 + $0x74] ss:$8 sps:$4 sm:$0xff]  }
  0x84   :  { %889 = vmatprep.subr.bf16.mxu1 %v4819_v61  ;;  %v4912_v61 = vld [vmem:[#allocation6 + $0x64] ss:$8 sps:$4 sm:$0xff]  }
  0x86   :  { %849 = vmatpush2.bf16.msra.mxu0 %v4818_v62  ;;  %v4910_v62 = vld [vmem:[#allocation6 + $0x60] ss:$8 sps:$4 sm:$0xff]  }
  0x87   :  { %850 = vmatprep.subr.bf16.mxu0 %v4822_v63  ;;  %890 = vmatpush2.bf16.msra.mxu1 %v4821_v0  ;;  %v4915_v63 = vld [vmem:[#allocation6 + $0x54] ss:$8 sps:$4 sm:$0xff]   ;;  %v4913_v0 = vld [vmem:[#allocation6 + $0x50] ss:$8 sps:$4 sm:$0xff]  }
  0x88   :  { %891 = vmatprep.subr.bf16.mxu1 %v4825_v1  ;;  %v4918_v1 = vld [vmem:[#allocation6 + $0x44] ss:$8 sps:$4 sm:$0xff]  }
  0x8a   :  { %851 = vmatpush2.bf16.msra.mxu0 %v4824_v2  ;;  %v4916_v2 = vld [vmem:[#allocation6 + $0x40] ss:$8 sps:$4 sm:$0xff]  }
  0x8b   :  { %902 = vmatprep.subr.bf16.mxu0 %v4832_v3  ;;  %892 = vmatpush2.bf16.msra.mxu1 %v4829_v4  ;;  %v4921_v3 = vld [vmem:[#allocation6 + $0x34] ss:$8 sps:$4 sm:$0xff]   ;;  %v4919_v4 = vld [vmem:[#allocation6 + $0x30] ss:$8 sps:$4 sm:$0xff]  }
  0x8c   :  { %943 = vmatprep.subr.bf16.mxu1 %v4858_v6  ;;  %v4922_v6 = vld [vmem:[#allocation6 + $0x20] ss:$8 sps:$4 sm:$0xff]  }
  0x8d   :  { %853 = vmatmul.mubr.bf16.vlgmr.msra.gmra.mxu0 %v4139_v5  ;;  %v4924_v5 = vld [vmem:[#allocation6 + $0x24] ss:$8 sps:$4 sm:$0xff]  }
  0x8e   :  { %903 = vmatpush1.bf16.msra.mxu0 %v4830_v7  ;;  %894 = vmatmul.mubr.bf16.vlgmr.msra.gmra.mxu1 %v4141_v8  ;;  %v4927_v7 = vld [vmem:[#allocation6 + $0x14] ss:$8 sps:$4 sm:$0xff]   ;;  %v4925_v8 = vld [vmem:[#allocation6 + $0x10] ss:$8 sps:$4 sm:$0xff]  }
  0x8f   :  { %904 = vmatprep.subr.bf16.mxu0 %v4837_v9  ;;  %944 = vmatpush1.bf16.msra.mxu1 %v4856_v10  ;;  %v4930_v9 = vld [vmem:[#allocation6 + $0x4] ss:$8 sps:$4 sm:$0xff]   ;;  %v4928_v10 = vld [vmem:[#allocation6] ss:$8 sps:$4 sm:$0xff]  }
  0x90   :  { %975 = vmatprep.mubr.bf16.mxu1 %v5619_v15  ;;  %945 = vmatprep.subr.bf16.mxu1 %v4864_v11  ;;  %v4933_v11 = vld [vmem:[#allocation6 + $0xf4] ss:$8 sps:$4 sm:$0xff]  }
  0x91   :  { %934 = vmatprep.mubr.bf16.mxu0 %v4144_v27  ;;  %v4939_v15 = vld [vmem:[#allocation6 + $0xd4] ss:$8 sps:$4 sm:$0xff]   ;;  %v4955_v27 = vld [vmem:[#allocation6 + $0x170] ss:$8 sps:$4 sm:$0xff]  }
  0x92   :  { %905 = vmatpush1.bf16.msra.mxu0 %v4835_v12  ;;  %v4931_v12 = vld [vmem:[#allocation6 + $0xf0] ss:$8 sps:$4 sm:$0xff]  }
  0x93   :  { %906 = vmatprep.subr.bf16.mxu0 %v4840_v13  ;;  %946 = vmatpush1.bf16.msra.mxu1 %v4862_v14  ;;  %v4936_v13 = vld [vmem:[#allocation6 + $0xe4] ss:$8 sps:$4 sm:$0xff]   ;;  %v4934_v14 = vld [vmem:[#allocation6 + $0xe0] ss:$8 sps:$4 sm:$0xff]  }
  0x94   :  { %947 = vmatprep.subr.bf16.mxu1 %v4870_v16  ;;  %v4937_v16 = vld [vmem:[#allocation6 + $0xd0] ss:$8 sps:$4 sm:$0xff]  }
  0x96   :  { %907 = vmatpush1.bf16.msra.mxu0 %v4838_v17  ;;  %v4942_v17 = vld [vmem:[#allocation6 + $0xc4] ss:$8 sps:$4 sm:$0xff]  }
  0x97   :  { %908 = vmatprep.subr.bf16.mxu0 %v4843_v18  ;;  %948 = vmatpush1.bf16.msra.mxu1 %v4868_v20  ;;  %v4940_v18 = vld [vmem:[#allocation6 + $0xc0] ss:$8 sps:$4 sm:$0xff]   ;;  %v4943_v20 = vld [vmem:[#allocation6 + $0xb0] ss:$8 sps:$4 sm:$0xff]  }
  0x98   :  { %949 = vmatprep.subr.bf16.mxu1 %v4876_v21  ;;  %v4948_v21 = vld [vmem:[#allocation6 + $0xa4] ss:$8 sps:$4 sm:$0xff]  }
  0x9a   :  { %909 = vmatpush1.bf16.msra.mxu0 %v4841_v19  ;;  %v4945_v19 = vld [vmem:[#allocation6 + $0xb4] ss:$8 sps:$4 sm:$0xff]  }
  0x9b   :  { %910 = vmatprep.subr.bf16.mxu0 %v4846_v22  ;;  %950 = vmatpush1.bf16.msra.mxu1 %v4874_v23  ;;  %v4946_v22 = vld [vmem:[#allocation6 + $0xa0] ss:$8 sps:$4 sm:$0xff]   ;;  %v4951_v23 = vld [vmem:[#allocation6 + $0x94] ss:$8 sps:$4 sm:$0xff]  }
  0x9c   :  { %951 = vmatprep.subr.bf16.mxu1 %v4882_v24  ;;  %v4949_v24 = vld [vmem:[#allocation6 + $0x90] ss:$8 sps:$4 sm:$0xff]  }
  0x9e   :  { %911 = vmatpush1.bf16.msra.mxu0 %v4844_v26  ;;  %v4952_v26 = vld [vmem:[#allocation6 + $0x80] ss:$8 sps:$4 sm:$0xff]  }
  0x9f   :  { %912 = vmatprep.subr.bf16.mxu0 %v4849_v28  ;;  %952 = vmatpush1.bf16.msra.mxu1 %v4880_v29  ;;  %v4957_v28 = vld [vmem:[#allocation6 + $0x174] ss:$8 sps:$4 sm:$0xff]   ;;  %v4960_v29 = vld [vmem:[#allocation6 + $0x164] ss:$8 sps:$4 sm:$0xff]  }
  0xa0   :  { %953 = vmatprep.subr.bf16.mxu1 %v4888_v30  ;;  %v4958_v30 = vld [vmem:[#allocation6 + $0x160] ss:$8 sps:$4 sm:$0xff]  }
  0xa2   :  { %913 = vmatpush1.bf16.msra.mxu0 %v4847_v31  ;;  %v4963_v31 = vld [vmem:[#allocation6 + $0x154] ss:$8 sps:$4 sm:$0xff]  }
  0xa3   :  { %914 = vmatprep.subr.bf16.mxu0 %v4852_v32  ;;  %954 = vmatpush1.bf16.msra.mxu1 %v4886_v33  ;;  %v4961_v32 = vld [vmem:[#allocation6 + $0x150] ss:$8 sps:$4 sm:$0xff]   ;;  %v4966_v33 = vld [vmem:[#allocation6 + $0x144] ss:$8 sps:$4 sm:$0xff]  }
  0xa4   :  { %955 = vmatprep.subr.bf16.mxu1 %v4894_v34  ;;  %v4964_v34 = vld [vmem:[#allocation6 + $0x140] ss:$8 sps:$4 sm:$0xff]  }
  0xa6   :  { %915 = vmatpush1.bf16.msra.mxu0 %v4850_v35  ;;  %v4969_v35 = vld [vmem:[#allocation6 + $0x134] ss:$8 sps:$4 sm:$0xff]  }
  0xa7   :  { %916 = vmatprep.subr.bf16.mxu0 %v4855_v36  ;;  %956 = vmatpush1.bf16.msra.mxu1 %v4892_v37  ;;  %v4967_v36 = vld [vmem:[#allocation6 + $0x130] ss:$8 sps:$4 sm:$0xff]   ;;  %v4972_v37 = vld [vmem:[#allocation6 + $0x124] ss:$8 sps:$4 sm:$0xff]  }
  0xa8   :  { %957 = vmatprep.subr.bf16.mxu1 %v4900_v38  ;;  %v4970_v38 = vld [vmem:[#allocation6 + $0x120] ss:$8 sps:$4 sm:$0xff]  }
  0xaa   :  { %917 = vmatpush1.bf16.msra.mxu0 %v4853_v39  ;;  %v4975_v39 = vld [vmem:[#allocation6 + $0x114] ss:$8 sps:$4 sm:$0xff]  }
  0xab   :  { %918 = vmatprep.subr.bf16.mxu0 %v4861_v40  ;;  %958 = vmatpush1.bf16.msra.mxu1 %v4898_v41  ;;  %v4973_v40 = vld [vmem:[#allocation6 + $0x110] ss:$8 sps:$4 sm:$0xff]   ;;  %v4978_v41 = vld [vmem:[#allocation6 + $0x104] ss:$8 sps:$4 sm:$0xff]  }
  0xac   :  { %1207 = vmatprep.subr.bf16.mxu1 %v4909_v60 }
  0xae   :  { %919 = vmatpush2.bf16.msra.mxu0 %v4859_v42  ;;  %976 = vmatmul.mubr.bf16.vlgmr.msra.gmra.mxu1 %v4904_v44  ;;  %v4976_v42 = vld [vmem:[#allocation6 + $0x100] ss:$8 sps:$4 sm:$0xff]   ;;  %v4979_v44 = vld [vmem:[#allocation6 + $0x1f0] ss:$8 sps:$4 sm:$0xff]  }
  0xaf   :  { %920 = vmatprep.subr.bf16.mxu0 %v4867_v43  ;;  %1208 = vmatpush1.bf16.msra.mxu1 %v4907_v59  ;;  %v4981_v43 = vld [vmem:[#allocation6 + $0x1f4] ss:$8 sps:$4 sm:$0xff]  }
  0xb0   :  { %1209 = vmatprep.subr.bf16.mxu1 %v4912_v61  ;;  %v225_v61 = vlaneseq }
  0xb2   :  { %921 = vmatpush2.bf16.msra.mxu0 %v4865_v45  ;;  %v4984_v45 = vld [vmem:[#allocation6 + $0x1e4] ss:$8 sps:$4 sm:$0xff]  }
  0xb3   :  { %922 = vmatprep.subr.bf16.mxu0 %v4873_v46  ;;  %1210 = vmatpush1.bf16.msra.mxu1 %v4910_v62  ;;  %v4982_v46 = vld [vmem:[#allocation6 + $0x1e0] ss:$8 sps:$4 sm:$0xff]   ;;  %v226_v62 = vshrl.u32 %v225_v61, 7 }
  0xb4   :  { %1211 = vmatprep.subr.bf16.mxu1 %v4915_v63 }
  0xb5   :  { %v5702_v63 = vsub.s32 0, %v226_v62 }
  0xb6   :  { %923 = vmatpush2.bf16.msra.mxu0 %v4871_v47  ;;  %v4987_v47 = vld [vmem:[#allocation6 + $0x1d4] ss:$8 sps:$4 sm:$0xff]  }
  0xb7   :  { %924 = vmatprep.subr.bf16.mxu0 %v4879_v48  ;;  %1212 = vmatpush1.bf16.msra.mxu1 %v4913_v0  ;;  %v4985_v48 = vld [vmem:[#allocation6 + $0x1d0] ss:$8 sps:$4 sm:$0xff]   ;;  %v223_v0 = vld [vmem:[#allocation4] sm:$0x3] }
  0xb8   :  { %1213 = vmatprep.subr.bf16.mxu1 %v4918_v1  ;;  %v5704_v1 = vsub.s32 1, %v226_v62 }
  0xba   :  { %925 = vmatpush2.bf16.msra.mxu0 %v4877_v49 }
  0xbb   :  { %926 = vmatprep.subr.bf16.mxu0 %v4885_v50  ;;  %1214 = vmatpush1.bf16.msra.mxu1 %v4916_v2  ;;  %v228_v2 = vrot.slane %v223_v0, %v5702_v63 }
  0xbc   :  { %1215 = vmatprep.subr.bf16.mxu1 %v4921_v3  ;;  %v232_v3 = vrot.slane %v223_v0, %v5704_v1 }
  0xbe   :  { %927 = vmatpush2.bf16.msra.mxu0 %v4883_v51 }
  0xbf   :  { %928 = vmatprep.subr.bf16.mxu0 %v4891_v52  ;;  %1216 = vmatpush1.bf16.msra.mxu1 %v4919_v4 }
  0xc0   :  { %1217 = vmatprep.subr.bf16.mxu1 %v4924_v5 }
  0xc2   :  { %929 = vmatpush2.bf16.msra.mxu0 %v4889_v53 }
  0xc3   :  { %930 = vmatprep.subr.bf16.mxu0 %v4897_v54  ;;  %1218 = vmatpush1.bf16.msra.mxu1 %v4922_v6 }
  0xc4   :  { %1219 = vmatprep.subr.bf16.mxu1 %v4927_v7 }
  0xc6   :  { %931 = vmatpush2.bf16.msra.mxu0 %v4895_v55 }
  0xc7   :  { %932 = vmatprep.subr.bf16.mxu0 %v4903_v56  ;;  %1220 = vmatpush1.bf16.msra.mxu1 %v4925_v8 }
  0xc8   :  { %1221 = vmatprep.subr.bf16.mxu1 %v4930_v9 }
  0xca   :  { %933 = vmatpush2.bf16.msra.mxu0 %v4901_v57 }
  0xcb   :  { %1222 = vmatpush1.bf16.msra.mxu1 %v4928_v10  ;;  %1474 = vmatprep.subr.bf16.mxu0 %v4957_v28  ;;  %v4997_v28 = vld [vmem:[#allocation6 + $0x190] ss:$8 sps:$4 sm:$0xff]  }
  0xcc   :  { %1223 = vmatprep.subr.bf16.mxu1 %v4933_v11 }
  0xcd   :  { %935 = vmatmul.mubr.bf16.vlgmr.msra.gmra.mxu0 %v4143_v58 }
  0xce   :  { %1475 = vmatpush1.bf16.msra.mxu0 %v4955_v27  ;;  %v4999_v27 = vld [vmem:[#allocation6 + $0x194] ss:$8 sps:$4 sm:$0xff]  }
  0xcf   :  { %1224 = vmatpush2.bf16.msra.mxu1 %v4931_v12  ;;  %1476 = vmatprep.subr.bf16.mxu0 %v4960_v29  ;;  %v5002_v29 = vld [vmem:[#allocation6 + $0x184] ss:$8 sps:$4 sm:$0xff]  }
  0xd0   :  { %1225 = vmatprep.subr.bf16.mxu1 %v4936_v13 }
  0xd2   :  { %1477 = vmatpush1.bf16.msra.mxu0 %v4958_v30  ;;  %v5000_v30 = vld [vmem:[#allocation6 + $0x180] ss:$8 sps:$4 sm:$0xff]  }
  0xd3   :  { %1226 = vmatpush2.bf16.msra.mxu1 %v4934_v14  ;;  %1478 = vmatprep.subr.bf16.mxu0 %v4963_v31  ;;  %v5003_v31 = vld [vmem:[#allocation6 + $0x270] ss:$8 sps:$4 sm:$0xff]  }
  0xd4   :  { %1227 = vmatprep.subr.bf16.mxu1 %v4939_v15 }
  0xd6   :  { %1479 = vmatpush1.bf16.msra.mxu0 %v4961_v32  ;;  %v5005_v32 = vld [vmem:[#allocation6 + $0x274] ss:$8 sps:$4 sm:$0xff]  }
  0xd7   :  { %1228 = vmatpush2.bf16.msra.mxu1 %v4937_v16  ;;  %1480 = vmatprep.subr.bf16.mxu0 %v4966_v33  ;;  %v5008_v33 = vld [vmem:[#allocation6 + $0x264] ss:$8 sps:$4 sm:$0xff]  }
  0xd8   :  { %1229 = vmatprep.subr.bf16.mxu1 %v4942_v17 }
  0xda   :  { %1481 = vmatpush1.bf16.msra.mxu0 %v4964_v34  ;;  %v5006_v34 = vld [vmem:[#allocation6 + $0x260] ss:$8 sps:$4 sm:$0xff]  }
  0xdb   :  { %1230 = vmatpush2.bf16.msra.mxu1 %v4940_v18  ;;  %1482 = vmatprep.subr.bf16.mxu0 %v4969_v35  ;;  %v5011_v35 = vld [vmem:[#allocation6 + $0x254] ss:$8 sps:$4 sm:$0xff]  }
  0xdc   :  { %1231 = vmatprep.subr.bf16.mxu1 %v4945_v19 }
  0xde   :  { %1483 = vmatpush1.bf16.msra.mxu0 %v4967_v36  ;;  %v5009_v36 = vld [vmem:[#allocation6 + $0x250] ss:$8 sps:$4 sm:$0xff]  }
  0xdf   :  { %1232 = vmatpush2.bf16.msra.mxu1 %v4943_v20  ;;  %1484 = vmatprep.subr.bf16.mxu0 %v4972_v37  ;;  %v5014_v37 = vld [vmem:[#allocation6 + $0x244] ss:$8 sps:$4 sm:$0xff]  }
  0xe0   :  { %1233 = vmatprep.subr.bf16.mxu1 %v4948_v21  ;;  %v4990_v21 = vld [vmem:[#allocation6 + $0x1c4] ss:$8 sps:$4 sm:$0xff]  }
  0xe2   :  { %1485 = vmatpush1.bf16.msra.mxu0 %v4970_v38  ;;  %v5012_v38 = vld [vmem:[#allocation6 + $0x240] ss:$8 sps:$4 sm:$0xff]  }
  0xe3   :  { %1234 = vmatpush2.bf16.msra.mxu1 %v4946_v22  ;;  %1486 = vmatprep.subr.bf16.mxu0 %v4975_v39  ;;  %v4988_v22 = vld [vmem:[#allocation6 + $0x1c0] ss:$8 sps:$4 sm:$0xff]   ;;  %v5017_v39 = vld [vmem:[#allocation6 + $0x234] ss:$8 sps:$4 sm:$0xff]  }
  0xe4   :  { %1235 = vmatprep.subr.bf16.mxu1 %v4951_v23  ;;  %v4993_v23 = vld [vmem:[#allocation6 + $0x1b4] ss:$8 sps:$4 sm:$0xff]  }
  0xe6   :  { %1487 = vmatpush1.bf16.msra.mxu0 %v4973_v40  ;;  %v5015_v40 = vld [vmem:[#allocation6 + $0x230] ss:$8 sps:$4 sm:$0xff]  }
  0xe7   :  { %1236 = vmatpush2.bf16.msra.mxu1 %v4949_v24  ;;  %1488 = vmatprep.subr.bf16.mxu0 %v4978_v41  ;;  %v4991_v24 = vld [vmem:[#allocation6 + $0x1b0] ss:$8 sps:$4 sm:$0xff]   ;;  %v5020_v41 = vld [vmem:[#allocation6 + $0x224] ss:$8 sps:$4 sm:$0xff]  }
  0xe8   :  { %1237 = vmatprep.subr.bf16.mxu1 %v4954_v25  ;;  %v4996_v25 = vld [vmem:[#allocation6 + $0x1a4] ss:$8 sps:$4 sm:$0xff]  }
  0xea   :  { %1489 = vmatpush1.bf16.msra.mxu0 %v4976_v42  ;;  %v5018_v42 = vld [vmem:[#allocation6 + $0x220] ss:$8 sps:$4 sm:$0xff]  }
  0xeb   :  { %1238 = vmatpush2.bf16.msra.mxu1 %v4952_v26  ;;  %1490 = vmatprep.subr.bf16.mxu0 %v4981_v43  ;;  %v4994_v26 = vld [vmem:[#allocation6 + $0x1a0] ss:$8 sps:$4 sm:$0xff]   ;;  %v5023_v43 = vld [vmem:[#allocation6 + $0x214] ss:$8 sps:$4 sm:$0xff]  }
  0xec   :  { %1741 = vmatprep.subr.bf16.mxu1 %v5005_v32  ;;  %v5077_v32 = vld [vmem:[#allocation6 + $0x3f4] ss:$8 sps:$4 sm:$0xff]  }
  0xee   :  { %1491 = vmatpush2.bf16.msra.mxu0 %v4979_v44  ;;  %v5021_v44 = vld [vmem:[#allocation6 + $0x210] ss:$8 sps:$4 sm:$0xff]  }
  0xef   :  { %1492 = vmatprep.subr.bf16.mxu0 %v4984_v45  ;;  %v5026_v45 = vld [vmem:[#allocation6 + $0x204] ss:$8 sps:$4 sm:$0xff]  }
  0xf2   :  { %1493 = vmatpush2.bf16.msra.mxu0 %v4982_v46  ;;  %v5024_v46 = vld [vmem:[#allocation6 + $0x200] ss:$8 sps:$4 sm:$0xff]  }
  0xf3   :  { %1494 = vmatprep.subr.bf16.mxu0 %v4987_v47  ;;  %v5029_v47 = vld [vmem:[#allocation6 + $0x2f4] ss:$8 sps:$4 sm:$0xff]  }
  0xf6   :  { %1495 = vmatpush2.bf16.msra.mxu0 %v4985_v48  ;;  %v5027_v48 = vld [vmem:[#allocation6 + $0x2f0] ss:$8 sps:$4 sm:$0xff]  }
  0xf7   :  { %1496 = vmatprep.subr.bf16.mxu0 %v4990_v21  ;;  %v5057_v21 = vld [vmem:[#allocation6 + $0x350] ss:$8 sps:$4 sm:$0xff]  }
  0xfa   :  { %1497 = vmatpush2.bf16.msra.mxu0 %v4988_v22  ;;  %v5062_v22 = vld [vmem:[#allocation6 + $0x344] ss:$8 sps:$4 sm:$0xff]  }
  0xfb   :  { %1498 = vmatprep.subr.bf16.mxu0 %v4993_v23  ;;  %v5060_v23 = vld [vmem:[#allocation6 + $0x340] ss:$8 sps:$4 sm:$0xff]  }
  0xfe   :  { %1499 = vmatpush2.bf16.msra.mxu0 %v4991_v24  ;;  %v5065_v24 = vld [vmem:[#allocation6 + $0x334] ss:$8 sps:$4 sm:$0xff]  }
  0xff   :  { %1500 = vmatprep.subr.bf16.mxu0 %v4996_v25  ;;  %v5063_v25 = vld [vmem:[#allocation6 + $0x330] ss:$8 sps:$4 sm:$0xff]  }
 0x102   :  { %1501 = vmatpush2.bf16.msra.mxu0 %v4994_v26  ;;  %v5068_v26 = vld [vmem:[#allocation6 + $0x324] ss:$8 sps:$4 sm:$0xff]  }
 0x103   :  { %1502 = vmatprep.subr.bf16.mxu0 %v4999_v27  ;;  %v5066_v27 = vld [vmem:[#allocation6 + $0x320] ss:$8 sps:$4 sm:$0xff]  }
 0x106   :  { %1503 = vmatpush2.bf16.msra.mxu0 %v4997_v28  ;;  %v5071_v28 = vld [vmem:[#allocation6 + $0x314] ss:$8 sps:$4 sm:$0xff]  }
 0x107   :  { %1504 = vmatprep.subr.bf16.mxu0 %v5002_v29  ;;  %v5069_v29 = vld [vmem:[#allocation6 + $0x310] ss:$8 sps:$4 sm:$0xff]  }
 0x10a   :  { %1505 = vmatpush2.bf16.msra.mxu0 %v5000_v30  ;;  %v5074_v30 = vld [vmem:[#allocation6 + $0x304] ss:$8 sps:$4 sm:$0xff]  }
 0x14d   :  { %v854_v49 = vpop.f32.mrf.mxu0 }
 0x14e   :  { %v895_v51 = vpop.f32.mrf.mxu1  ;;  %v855_v4 = vadd.f32 %v854_v49, %v228_v2  ;;  %v5032_v49 = vld [vmem:[#allocation6 + $0x2e4] ss:$8 sps:$4 sm:$0xff]  }
 0x14f   :  { %v856_v50 = vpop.f32.mrf.mxu0 }
 0x150   :  { %v897_v53 = vpop.f32.mrf.mxu1  ;;  %v857_v5 = vadd.f32 %v856_v50, %v232_v3  ;;  %v896_v6 = vadd.f32 %v895_v51, %v855_v4  ;;  %v5030_v50 = vld [vmem:[#allocation6 + $0x2e0] ss:$8 sps:$4 sm:$0xff]   ;;  %v5035_v51 = vld [vmem:[#allocation6 + $0x2d4] ss:$8 sps:$4 sm:$0xff]  }
 0x151   :  { %v858_v52 = vpop.f32.mrf.mxu0 }
 0x152   :  { %v899_v55 = vpop.f32.mrf.mxu1  ;;  %v898_v8 = vadd.f32 %v897_v53, %v857_v5  ;;  %v5033_v52 = vld [vmem:[#allocation6 + $0x2d0] ss:$8 sps:$4 sm:$0xff]   ;;  %v1028_v53 = vld [vmem:[#allocation7] sm:$0x3] }
 0x153   :  { %v859_v54 = vpop.f32.mrf.mxu0  ;;  %v1037_v55 = vrot.slane %v1028_v53, %v5704_v1 }
 0x154   :  { %v900_v56 = vpop.f32.mrf.mxu1  ;;  %v1033_v54 = vrot.slane %v1028_v53, %v5702_v63  ;;  %v5084_v53 = vld [vmem:[#allocation6 + $0x3c0] ss:$8 sps:$4 sm:$0xff]  }
 0x16e   :  { %v977_v57 = vpop.f32.mrf.mxu1 }
 0x170   :  { %v979_v58 = vpop.f32.mrf.mxu1 }
 0x172   :  { %v981_v59 = vpop.f32.mrf.mxu1 }
 0x174   :  { %v982_v60 = vpop.f32.mrf.mxu1 }
 0x18d   :  { %v936_v7 = vpop.f32.mrf.mxu0 }
 0x18e   :  { %v937_v9 = vadd.f32 %v936_v7, %v896_v6  ;;  %v5038_v6 = vld [vmem:[#allocation6 + $0x2c4] ss:$8 sps:$4 sm:$0xff]   ;;  %v5036_v7 = vld [vmem:[#allocation6 + $0x2c0] ss:$8 sps:$4 sm:$0xff]  }
 0x18f   :  { %v938_v10 = vpop.f32.mrf.mxu0 }
 0x190   :  { %v978_v11 = vadd.f32 %v977_v57, %v937_v9  ;;  %v939_v12 = vadd.f32 %v938_v10, %v898_v8  ;;  %v5041_v8 = vld [vmem:[#allocation6 + $0x2b4] ss:$8 sps:$4 sm:$0xff]   ;;  %v5039_v9 = vld [vmem:[#allocation6 + $0x2b0] ss:$8 sps:$4 sm:$0xff]   ;;  %v5044_v10 = vld [vmem:[#allocation6 + $0x2a4] ss:$8 sps:$4 sm:$0xff]  }
 0x191   :  { %v940_v13 = vpop.f32.mrf.mxu0 }
 0x192   :  { %v980_v14 = vadd.f32 %v979_v58, %v939_v12  ;;  %v984_v16 = vmax.f32 %v978_v11, 0.0  ;;  %v5042_v11 = vld [vmem:[#allocation6 + $0x2a0] ss:$8 sps:$4 sm:$0xff]   ;;  %v5047_v12 = vld [vmem:[#allocation6 + $0x294] ss:$8 sps:$4 sm:$0xff]  }
 0x193   :  { %v941_v15 = vpop.f32.mrf.mxu0  ;;  %v5045_v13 = vld [vmem:[#allocation6 + $0x290] ss:$8 sps:$4 sm:$0xff]  }
 0x194   :  { %v985_v17 = vmax.f32 %v980_v14, 0.0  ;;  %v5455_v19 = vpack.c.bf16 %v984_v16, %v984_v16  ;;  %v5050_v14 = vld [vmem:[#allocation6 + $0x284] ss:$8 sps:$4 sm:$0xff]   ;;  %v5048_v15 = vld [vmem:[#allocation6 + $0x280] ss:$8 sps:$4 sm:$0xff]  }
 0x196   :  { %v4685_v18 = vpack.c.bf16 %v985_v17, %v984_v16  ;;  %v5456_v20 = vpack.c.bf16 %v985_v17, %v985_v17  ;;  %v5051_v16 = vld [vmem:[#allocation6 + $0x370] ss:$8 sps:$4 sm:$0xff]   ;;  %v5053_v17 = vld [vmem:[#allocation6 + $0x374] ss:$8 sps:$4 sm:$0xff]  }
 0x197   :  { %2008 = vmatprep.subr.bf16.mxu0 %v5053_v17  ;;  %v5125_v17 = vld [vmem:[#allocation6 + $0x4f4] ss:$8 sps:$4 sm:$0xff]  }
 0x198   :  { %994 = vst [vmem:[%s5777_s7] sm:$0xff] %v4685_v18  ;;  %1239 = vmatprep.mubr.bf16.mxu1 %v5456_v20  ;;  %v5056_v18 = vld [vmem:[#allocation6 + $0x364] ss:$8 sps:$4 sm:$0xff]   ;;  %v5059_v20 = vld [vmem:[#allocation6 + $0x354] ss:$8 sps:$4 sm:$0xff]  }
 0x199   :  { %1240 = vmatmul.mubr.bf16.vlgmr.msra.gmra.mxu1 %v5455_v19  ;;  %v5054_v19 = vld [vmem:[#allocation6 + $0x360] ss:$8 sps:$4 sm:$0xff]  }
 0x19a   :  { %1742 = vmatpush1.bf16.msra.mxu1 %v5003_v31  ;;  %v5072_v31 = vld [vmem:[#allocation6 + $0x300] ss:$8 sps:$4 sm:$0xff]  }
 0x19b   :  { %1743 = vmatprep.subr.bf16.mxu1 %v5008_v33  ;;  %v5075_v33 = vld [vmem:[#allocation6 + $0x3f0] ss:$8 sps:$4 sm:$0xff]  }
 0x19e   :  { %1744 = vmatpush1.bf16.msra.mxu1 %v5006_v34  ;;  %v5080_v34 = vld [vmem:[#allocation6 + $0x3e4] ss:$8 sps:$4 sm:$0xff]  }
 0x19f   :  { %1745 = vmatprep.subr.bf16.mxu1 %v5011_v35  ;;  %v5078_v35 = vld [vmem:[#allocation6 + $0x3e0] ss:$8 sps:$4 sm:$0xff]  }
 0x1a2   :  { %1746 = vmatpush1.bf16.msra.mxu1 %v5009_v36  ;;  %v5083_v36 = vld [vmem:[#allocation6 + $0x3d4] ss:$8 sps:$4 sm:$0xff]  }
 0x1a3   :  { %1747 = vmatprep.subr.bf16.mxu1 %v5014_v37  ;;  %v5081_v37 = vld [vmem:[#allocation6 + $0x3d0] ss:$8 sps:$4 sm:$0xff]  }
 0x1a6   :  { %1748 = vmatpush1.bf16.msra.mxu1 %v5012_v38  ;;  %v1295_v38 = vld [vmem:[#allocation7 + $0x2] sm:$0x3] }
 0x1a7   :  { %1749 = vmatprep.subr.bf16.mxu1 %v5017_v39  ;;  %v1300_v39 = vrot.slane %v1295_v38, %v5702_v63 }
 0x1aa   :  { %1750 = vmatpush1.bf16.msra.mxu1 %v5015_v40  ;;  %v1304_v40 = vrot.slane %v1295_v38, %v5704_v1  ;;  %v5132_v38 = vld [vmem:[#allocation6 + $0x4c0] ss:$8 sps:$4 sm:$0xff]  }
 0x1ab   :  { %1751 = vmatprep.subr.bf16.mxu1 %v5020_v41 }
 0x1ae   :  { %1752 = vmatpush1.bf16.msra.mxu1 %v5018_v42 }
 0x1af   :  { %1753 = vmatprep.subr.bf16.mxu1 %v5023_v43 }
 0x1b2   :  { %1754 = vmatpush1.bf16.msra.mxu1 %v5021_v44 }
 0x1b3   :  { %1755 = vmatprep.subr.bf16.mxu1 %v5026_v45 }
 0x1b6   :  { %1756 = vmatpush1.bf16.msra.mxu1 %v5024_v46 }
 0x1b7   :  { %1757 = vmatprep.subr.bf16.mxu1 %v5029_v47 }
 0x1ba   :  { %1758 = vmatpush2.bf16.msra.mxu1 %v5027_v48 }
 0x1bb   :  { %1759 = vmatprep.subr.bf16.mxu1 %v5032_v49 }
 0x1be   :  { %1760 = vmatpush2.bf16.msra.mxu1 %v5030_v50 }
 0x1bf   :  { %1761 = vmatprep.subr.bf16.mxu1 %v5035_v51 }
 0x1c2   :  { %1762 = vmatpush2.bf16.msra.mxu1 %v5033_v52  ;;  %v5086_v52 = vld [vmem:[#allocation6 + $0x3c4] ss:$8 sps:$4 sm:$0xff]  }
 0x1c3   :  { %1763 = vmatprep.subr.bf16.mxu1 %v5038_v6  ;;  %v5105_v6 = vld [vmem:[#allocation6 + $0x450] ss:$8 sps:$4 sm:$0xff]  }
 0x1c6   :  { %1764 = vmatpush2.bf16.msra.mxu1 %v5036_v7  ;;  %v5110_v7 = vld [vmem:[#allocation6 + $0x444] ss:$8 sps:$4 sm:$0xff]  }
 0x1c7   :  { %1765 = vmatprep.subr.bf16.mxu1 %v5041_v8  ;;  %v5108_v8 = vld [vmem:[#allocation6 + $0x440] ss:$8 sps:$4 sm:$0xff]  }
 0x1ca   :  { %1766 = vmatpush2.bf16.msra.mxu1 %v5039_v9  ;;  %v5113_v9 = vld [vmem:[#allocation6 + $0x434] ss:$8 sps:$4 sm:$0xff]  }
 0x1cb   :  { %1767 = vmatprep.subr.bf16.mxu1 %v5044_v10  ;;  %v5111_v10 = vld [vmem:[#allocation6 + $0x430] ss:$8 sps:$4 sm:$0xff]  }
 0x1ce   :  { %1768 = vmatpush2.bf16.msra.mxu1 %v5042_v11  ;;  %v5116_v11 = vld [vmem:[#allocation6 + $0x424] ss:$8 sps:$4 sm:$0xff]  }
 0x1cf   :  { %1769 = vmatprep.subr.bf16.mxu1 %v5047_v12  ;;  %v5114_v12 = vld [vmem:[#allocation6 + $0x420] ss:$8 sps:$4 sm:$0xff]  }
 0x1d2   :  { %1770 = vmatpush2.bf16.msra.mxu1 %v5045_v13  ;;  %v5119_v13 = vld [vmem:[#allocation6 + $0x414] ss:$8 sps:$4 sm:$0xff]  }
 0x1d3   :  { %1771 = vmatprep.subr.bf16.mxu1 %v5050_v14  ;;  %v5117_v14 = vld [vmem:[#allocation6 + $0x410] ss:$8 sps:$4 sm:$0xff]  }
 0x1d6   :  { %1772 = vmatpush2.bf16.msra.mxu1 %v5048_v15  ;;  %v5122_v15 = vld [vmem:[#allocation6 + $0x404] ss:$8 sps:$4 sm:$0xff]  }
 0x259   :  { %v1241_v56 = vpop.f32.mrf.mxu1 }
 0x25a   :  { %v1242_v57 = vadd.f32 %v1241_v56, %v1033_v54  ;;  %v5089_v54 = vld [vmem:[#allocation6 + $0x3b4] ss:$8 sps:$4 sm:$0xff]   ;;  %v5092_v56 = vld [vmem:[#allocation6 + $0x3a4] ss:$8 sps:$4 sm:$0xff]  }
 0x25b   :  { %v1243_v58 = vpop.f32.mrf.mxu1 }
 0x25c   :  { %v1244_v59 = vadd.f32 %v1243_v58, %v1037_v55  ;;  %v1248_v62 = vmax.f32 %v1242_v57, 0.0  ;;  %v5087_v55 = vld [vmem:[#allocation6 + $0x3b0] ss:$8 sps:$4 sm:$0xff]   ;;  %v5090_v57 = vld [vmem:[#allocation6 + $0x3a0] ss:$8 sps:$4 sm:$0xff]  }
 0x25d   :  { %v1245_v60 = vpop.f32.mrf.mxu1  ;;  %v5095_v58 = vld [vmem:[#allocation6 + $0x394] ss:$8 sps:$4 sm:$0xff]  }
 0x25e   :  { %v1249_v0 = vmax.f32 %v1244_v59, 0.0  ;;  %v5457_v4 = vpack.c.bf16 %v1248_v62, %v1248_v62  ;;  %v5093_v59 = vld [vmem:[#allocation6 + $0x390] ss:$8 sps:$4 sm:$0xff]   ;;  %v5098_v60 = vld [vmem:[#allocation6 + $0x384] ss:$8 sps:$4 sm:$0xff]  }
 0x25f   :  { %v1246_v2 = vpop.f32.mrf.mxu1 }
 0x260   :  { %v4686_v3 = vpack.c.bf16 %v1249_v0, %v1248_v62  ;;  %v5458_v5 = vpack.c.bf16 %v1249_v0, %v1249_v0  ;;  %v5096_v62 = vld [vmem:[#allocation6 + $0x380] ss:$8 sps:$4 sm:$0xff]   ;;  %v5099_v0 = vld [vmem:[#allocation6 + $0x470] ss:$8 sps:$4 sm:$0xff]   ;;  %v5101_v2 = vld [vmem:[#allocation6 + $0x474] ss:$8 sps:$4 sm:$0xff]  }
 0x261   :  { %2275 = vmatprep.subr.bf16.mxu1 %v5101_v2  ;;  %v5173_v2 = vld [vmem:[#allocation6 + $0x5f4] ss:$8 sps:$4 sm:$0xff]  }
 0x262   :  { %4294 = vst [vmem:[%s5777_s7 + $0x8] sm:$0xff] %v4686_v3  ;;  %1506 = vmatprep.mubr.bf16.mxu0 %v5458_v5  ;;  %v5104_v3 = vld [vmem:[#allocation6 + $0x464] ss:$8 sps:$4 sm:$0xff]   ;;  %v5107_v5 = vld [vmem:[#allocation6 + $0x454] ss:$8 sps:$4 sm:$0xff]  }
 0x263   :  { %1507 = vmatmul.mubr.bf16.vlgmr.msra.gmra.mxu0 %v5457_v4  ;;  %v5102_v4 = vld [vmem:[#allocation6 + $0x460] ss:$8 sps:$4 sm:$0xff]  }
 0x264   :  { %2009 = vmatpush1.bf16.msra.mxu0 %v5051_v16  ;;  %v5120_v16 = vld [vmem:[#allocation6 + $0x400] ss:$8 sps:$4 sm:$0xff]  }
 0x265   :  { %2010 = vmatprep.subr.bf16.mxu0 %v5056_v18  ;;  %v5123_v18 = vld [vmem:[#allocation6 + $0x4f0] ss:$8 sps:$4 sm:$0xff]  }
 0x268   :  { %2011 = vmatpush1.bf16.msra.mxu0 %v5054_v19  ;;  %v5128_v19 = vld [vmem:[#allocation6 + $0x4e4] ss:$8 sps:$4 sm:$0xff]  }
 0x269   :  { %2012 = vmatprep.subr.bf16.mxu0 %v5059_v20  ;;  %v5126_v20 = vld [vmem:[#allocation6 + $0x4e0] ss:$8 sps:$4 sm:$0xff]  }
 0x26c   :  { %2013 = vmatpush1.bf16.msra.mxu0 %v5057_v21  ;;  %v5131_v21 = vld [vmem:[#allocation6 + $0x4d4] ss:$8 sps:$4 sm:$0xff]  }
 0x26d   :  { %2014 = vmatprep.subr.bf16.mxu0 %v5062_v22  ;;  %v5129_v22 = vld [vmem:[#allocation6 + $0x4d0] ss:$8 sps:$4 sm:$0xff]  }
 0x270   :  { %2015 = vmatpush1.bf16.msra.mxu0 %v5060_v23  ;;  %v1562_v23 = vld [vmem:[#allocation7 + $0x4] sm:$0x3] }
 0x271   :  { %2016 = vmatprep.subr.bf16.mxu0 %v5065_v24  ;;  %v1567_v24 = vrot.slane %v1562_v23, %v5702_v63 }
 0x274   :  { %2017 = vmatpush1.bf16.msra.mxu0 %v5063_v25  ;;  %v1571_v25 = vrot.slane %v1562_v23, %v5704_v1  ;;  %v5180_v23 = vld [vmem:[#allocation6 + $0x5c0] ss:$8 sps:$4 sm:$0xff]  }
 0x275   :  { %2018 = vmatprep.subr.bf16.mxu0 %v5068_v26 }
 0x278   :  { %2019 = vmatpush1.bf16.msra.mxu0 %v5066_v27 }
 0x279   :  { %2020 = vmatprep.subr.bf16.mxu0 %v5071_v28 }
 0x27c   :  { %2021 = vmatpush1.bf16.msra.mxu0 %v5069_v29 }
 0x27d   :  { %2022 = vmatprep.subr.bf16.mxu0 %v5074_v30 }
 0x280   :  { %2023 = vmatpush1.bf16.msra.mxu0 %v5072_v31 }
 0x281   :  { %2024 = vmatprep.subr.bf16.mxu0 %v5077_v32 }
 0x284   :  { %2025 = vmatpush2.bf16.msra.mxu0 %v5075_v33 }
 0x285   :  { %2026 = vmatprep.subr.bf16.mxu0 %v5080_v34 }
 0x288   :  { %2027 = vmatpush2.bf16.msra.mxu0 %v5078_v35 }
 0x289   :  { %2028 = vmatprep.subr.bf16.mxu0 %v5083_v36 }
 0x28c   :  { %2029 = vmatpush2.bf16.msra.mxu0 %v5081_v37  ;;  %v5134_v37 = vld [vmem:[#allocation6 + $0x4c4] ss:$8 sps:$4 sm:$0xff]  }
 0x28d   :  { %2030 = vmatprep.subr.bf16.mxu0 %v5086_v52  ;;  %v5153_v52 = vld [vmem:[#allocation6 + $0x550] ss:$8 sps:$4 sm:$0xff]  }
 0x290   :  { %2031 = vmatpush2.bf16.msra.mxu0 %v5084_v53  ;;  %v5158_v53 = vld [vmem:[#allocation6 + $0x544] ss:$8 sps:$4 sm:$0xff]  }
 0x291   :  { %2032 = vmatprep.subr.bf16.mxu0 %v5089_v54  ;;  %v5156_v54 = vld [vmem:[#allocation6 + $0x540] ss:$8 sps:$4 sm:$0xff]  }
 0x294   :  { %2033 = vmatpush2.bf16.msra.mxu0 %v5087_v55  ;;  %v5161_v55 = vld [vmem:[#allocation6 + $0x534] ss:$8 sps:$4 sm:$0xff]  }
 0x295   :  { %2034 = vmatprep.subr.bf16.mxu0 %v5092_v56  ;;  %v5159_v56 = vld [vmem:[#allocation6 + $0x530] ss:$8 sps:$4 sm:$0xff]  }
 0x298   :  { %2035 = vmatpush2.bf16.msra.mxu0 %v5090_v57  ;;  %v5164_v57 = vld [vmem:[#allocation6 + $0x524] ss:$8 sps:$4 sm:$0xff]  }
 0x299   :  { %2036 = vmatprep.subr.bf16.mxu0 %v5095_v58  ;;  %v5162_v58 = vld [vmem:[#allocation6 + $0x520] ss:$8 sps:$4 sm:$0xff]  }
 0x29c   :  { %2037 = vmatpush2.bf16.msra.mxu0 %v5093_v59  ;;  %v5167_v59 = vld [vmem:[#allocation6 + $0x514] ss:$8 sps:$4 sm:$0xff]  }
 0x29d   :  { %2038 = vmatprep.subr.bf16.mxu0 %v5098_v60  ;;  %v5165_v60 = vld [vmem:[#allocation6 + $0x510] ss:$8 sps:$4 sm:$0xff]  }
 0x2a0   :  { %2039 = vmatpush2.bf16.msra.mxu0 %v5096_v62  ;;  %v5170_v62 = vld [vmem:[#allocation6 + $0x504] ss:$8 sps:$4 sm:$0xff]  }
 0x323   :  { %v1508_v41 = vpop.f32.mrf.mxu0 }
 0x324   :  { %v1509_v42 = vadd.f32 %v1508_v41, %v1300_v39  ;;  %v5137_v39 = vld [vmem:[#allocation6 + $0x4b4] ss:$8 sps:$4 sm:$0xff]   ;;  %v5140_v41 = vld [vmem:[#allocation6 + $0x4a4] ss:$8 sps:$4 sm:$0xff]  }
 0x325   :  { %v1510_v43 = vpop.f32.mrf.mxu0 }
 0x326   :  { %v1511_v44 = vadd.f32 %v1510_v43, %v1304_v40  ;;  %v1515_v46 = vmax.f32 %v1509_v42, 0.0  ;;  %v5135_v40 = vld [vmem:[#allocation6 + $0x4b0] ss:$8 sps:$4 sm:$0xff]   ;;  %v5138_v42 = vld [vmem:[#allocation6 + $0x4a0] ss:$8 sps:$4 sm:$0xff]  }
 0x327   :  { %v1512_v45 = vpop.f32.mrf.mxu0  ;;  %v5143_v43 = vld [vmem:[#allocation6 + $0x494] ss:$8 sps:$4 sm:$0xff]  }
 0x328   :  { %v1516_v47 = vmax.f32 %v1511_v44, 0.0  ;;  %v5459_v50 = vpack.c.bf16 %v1515_v46, %v1515_v46  ;;  %v5141_v44 = vld [vmem:[#allocation6 + $0x490] ss:$8 sps:$4 sm:$0xff]   ;;  %v5146_v45 = vld [vmem:[#allocation6 + $0x484] ss:$8 sps:$4 sm:$0xff]  }
 0x329   :  { %v1513_v48 = vpop.f32.mrf.mxu0 }
 0x32a   :  { %v4687_v49 = vpack.c.bf16 %v1516_v47, %v1515_v46  ;;  %v5460_v51 = vpack.c.bf16 %v1516_v47, %v1516_v47  ;;  %v5144_v46 = vld [vmem:[#allocation6 + $0x480] ss:$8 sps:$4 sm:$0xff]   ;;  %v5147_v47 = vld [vmem:[#allocation6 + $0x570] ss:$8 sps:$4 sm:$0xff]   ;;  %v5149_v48 = vld [vmem:[#allocation6 + $0x574] ss:$8 sps:$4 sm:$0xff]  }
 0x32b   :  { %2542 = vmatprep.subr.bf16.mxu0 %v5149_v48  ;;  %v5221_v48 = vld [vmem:[#allocation6 + $0x6f4] ss:$8 sps:$4 sm:$0xff]  }
 0x32c   :  { %4331 = vst [vmem:[%s5777_s7 + $0x10] sm:$0xff] %v4687_v49  ;;  %1773 = vmatprep.mubr.bf16.mxu1 %v5460_v51  ;;  %v5152_v49 = vld [vmem:[#allocation6 + $0x564] ss:$8 sps:$4 sm:$0xff]   ;;  %v5155_v51 = vld [vmem:[#allocation6 + $0x554] ss:$8 sps:$4 sm:$0xff]  }
 0x32d   :  { %1774 = vmatmul.mubr.bf16.vlgmr.msra.gmra.mxu1 %v5459_v50  ;;  %v5150_v50 = vld [vmem:[#allocation6 + $0x560] ss:$8 sps:$4 sm:$0xff]  }
 0x32e   :  { %2276 = vmatpush1.bf16.msra.mxu1 %v5099_v0  ;;  %v5168_v0 = vld [vmem:[#allocation6 + $0x500] ss:$8 sps:$4 sm:$0xff]  }
 0x32f   :  { %2277 = vmatprep.subr.bf16.mxu1 %v5104_v3  ;;  %v5171_v3 = vld [vmem:[#allocation6 + $0x5f0] ss:$8 sps:$4 sm:$0xff]  }
 0x332   :  { %2278 = vmatpush1.bf16.msra.mxu1 %v5102_v4  ;;  %v5176_v4 = vld [vmem:[#allocation6 + $0x5e4] ss:$8 sps:$4 sm:$0xff]  }
 0x333   :  { %2279 = vmatprep.subr.bf16.mxu1 %v5107_v5  ;;  %v5174_v5 = vld [vmem:[#allocation6 + $0x5e0] ss:$8 sps:$4 sm:$0xff]  }
 0x336   :  { %2280 = vmatpush1.bf16.msra.mxu1 %v5105_v6  ;;  %v5179_v6 = vld [vmem:[#allocation6 + $0x5d4] ss:$8 sps:$4 sm:$0xff]  }
 0x337   :  { %2281 = vmatprep.subr.bf16.mxu1 %v5110_v7  ;;  %v5177_v7 = vld [vmem:[#allocation6 + $0x5d0] ss:$8 sps:$4 sm:$0xff]  }
 0x33a   :  { %2282 = vmatpush1.bf16.msra.mxu1 %v5108_v8  ;;  %v1829_v8 = vld [vmem:[#allocation7 + $0x6] sm:$0x3] }
 0x33b   :  { %2283 = vmatprep.subr.bf16.mxu1 %v5113_v9  ;;  %v1834_v9 = vrot.slane %v1829_v8, %v5702_v63 }
 0x33e   :  { %2284 = vmatpush1.bf16.msra.mxu1 %v5111_v10  ;;  %v1838_v10 = vrot.slane %v1829_v8, %v5704_v1  ;;  %v5228_v8 = vld [vmem:[#allocation6 + $0x6c0] ss:$8 sps:$4 sm:$0xff]  }
 0x33f   :  { %2285 = vmatprep.subr.bf16.mxu1 %v5116_v11 }
 0x342   :  { %2286 = vmatpush1.bf16.msra.mxu1 %v5114_v12 }
 0x343   :  { %2287 = vmatprep.subr.bf16.mxu1 %v5119_v13 }
 0x346   :  { %2288 = vmatpush1.bf16.msra.mxu1 %v5117_v14 }
 0x347   :  { %2289 = vmatprep.subr.bf16.mxu1 %v5122_v15 }
 0x34a   :  { %2290 = vmatpush1.bf16.msra.mxu1 %v5120_v16 }
 0x34b   :  { %2291 = vmatprep.subr.bf16.mxu1 %v5125_v17 }
 0x34e   :  { %2292 = vmatpush2.bf16.msra.mxu1 %v5123_v18 }
 0x34f   :  { %2293 = vmatprep.subr.bf16.mxu1 %v5128_v19 }
 0x352   :  { %2294 = vmatpush2.bf16.msra.mxu1 %v5126_v20 }
 0x353   :  { %2295 = vmatprep.subr.bf16.mxu1 %v5131_v21 }
 0x356   :  { %2296 = vmatpush2.bf16.msra.mxu1 %v5129_v22  ;;  %v5182_v22 = vld [vmem:[#allocation6 + $0x5c4] ss:$8 sps:$4 sm:$0xff]  }
 0x357   :  { %2297 = vmatprep.subr.bf16.mxu1 %v5134_v37  ;;  %v5201_v37 = vld [vmem:[#allocation6 + $0x650] ss:$8 sps:$4 sm:$0xff]  }
 0x35a   :  { %2298 = vmatpush2.bf16.msra.mxu1 %v5132_v38  ;;  %v5206_v38 = vld [vmem:[#allocation6 + $0x644] ss:$8 sps:$4 sm:$0xff]  }
 0x35b   :  { %2299 = vmatprep.subr.bf16.mxu1 %v5137_v39  ;;  %v5204_v39 = vld [vmem:[#allocation6 + $0x640] ss:$8 sps:$4 sm:$0xff]  }
 0x35e   :  { %2300 = vmatpush2.bf16.msra.mxu1 %v5135_v40  ;;  %v5209_v40 = vld [vmem:[#allocation6 + $0x634] ss:$8 sps:$4 sm:$0xff]  }
 0x35f   :  { %2301 = vmatprep.subr.bf16.mxu1 %v5140_v41  ;;  %v5207_v41 = vld [vmem:[#allocation6 + $0x630] ss:$8 sps:$4 sm:$0xff]  }
 0x362   :  { %2302 = vmatpush2.bf16.msra.mxu1 %v5138_v42  ;;  %v5212_v42 = vld [vmem:[#allocation6 + $0x624] ss:$8 sps:$4 sm:$0xff]  }
 0x363   :  { %2303 = vmatprep.subr.bf16.mxu1 %v5143_v43  ;;  %v5210_v43 = vld [vmem:[#allocation6 + $0x620] ss:$8 sps:$4 sm:$0xff]  }
 0x366   :  { %2304 = vmatpush2.bf16.msra.mxu1 %v5141_v44  ;;  %v5215_v44 = vld [vmem:[#allocation6 + $0x614] ss:$8 sps:$4 sm:$0xff]  }
 0x367   :  { %2305 = vmatprep.subr.bf16.mxu1 %v5146_v45  ;;  %v5213_v45 = vld [vmem:[#allocation6 + $0x610] ss:$8 sps:$4 sm:$0xff]  }
 0x36a   :  { %2306 = vmatpush2.bf16.msra.mxu1 %v5144_v46  ;;  %v5218_v46 = vld [vmem:[#allocation6 + $0x604] ss:$8 sps:$4 sm:$0xff]  }
 0x3ed   :  { %v1775_v26 = vpop.f32.mrf.mxu1 }
 0x3ee   :  { %v1776_v27 = vadd.f32 %v1775_v26, %v1567_v24  ;;  %v5185_v24 = vld [vmem:[#allocation6 + $0x5b4] ss:$8 sps:$4 sm:$0xff]   ;;  %v5188_v26 = vld [vmem:[#allocation6 + $0x5a4] ss:$8 sps:$4 sm:$0xff]  }
 0x3ef   :  { %v1777_v28 = vpop.f32.mrf.mxu1 }
 0x3f0   :  { %v1778_v29 = vadd.f32 %v1777_v28, %v1571_v25  ;;  %v1782_v31 = vmax.f32 %v1776_v27, 0.0  ;;  %v5183_v25 = vld [vmem:[#allocation6 + $0x5b0] ss:$8 sps:$4 sm:$0xff]   ;;  %v5186_v27 = vld [vmem:[#allocation6 + $0x5a0] ss:$8 sps:$4 sm:$0xff]  }
 0x3f1   :  { %v1779_v30 = vpop.f32.mrf.mxu1  ;;  %v5191_v28 = vld [vmem:[#allocation6 + $0x594] ss:$8 sps:$4 sm:$0xff]  }
 0x3f2   :  { %v1783_v32 = vmax.f32 %v1778_v29, 0.0  ;;  %v5461_v35 = vpack.c.bf16 %v1782_v31, %v1782_v31  ;;  %v5189_v29 = vld [vmem:[#allocation6 + $0x590] ss:$8 sps:$4 sm:$0xff]   ;;  %v5194_v30 = vld [vmem:[#allocation6 + $0x584] ss:$8 sps:$4 sm:$0xff]  }
 0x3f3   :  { %v1780_v33 = vpop.f32.mrf.mxu1 }
 0x3f4   :  { %v4688_v34 = vpack.c.bf16 %v1783_v32, %v1782_v31  ;;  %v5462_v36 = vpack.c.bf16 %v1783_v32, %v1783_v32  ;;  %v5192_v31 = vld [vmem:[#allocation6 + $0x580] ss:$8 sps:$4 sm:$0xff]   ;;  %v5195_v32 = vld [vmem:[#allocation6 + $0x670] ss:$8 sps:$4 sm:$0xff]   ;;  %v5197_v33 = vld [vmem:[#allocation6 + $0x674] ss:$8 sps:$4 sm:$0xff]  }
 0x3f5   :  { %2809 = vmatprep.subr.bf16.mxu1 %v5197_v33  ;;  %v5269_v33 = vld [vmem:[#allocation6 + $0x7f4] ss:$8 sps:$4 sm:$0xff]  }
 0x3f6   :  { %4368 = vst [vmem:[%s5777_s7 + $0x18] sm:$0xff] %v4688_v34  ;;  %2040 = vmatprep.mubr.bf16.mxu0 %v5462_v36  ;;  %v5200_v34 = vld [vmem:[#allocation6 + $0x664] ss:$8 sps:$4 sm:$0xff]   ;;  %v5203_v36 = vld [vmem:[#allocation6 + $0x654] ss:$8 sps:$4 sm:$0xff]  }
 0x3f7   :  { %2041 = vmatmul.mubr.bf16.vlgmr.msra.gmra.mxu0 %v5461_v35  ;;  %v5198_v35 = vld [vmem:[#allocation6 + $0x660] ss:$8 sps:$4 sm:$0xff]  }
 0x3f8   :  { %2543 = vmatpush1.bf16.msra.mxu0 %v5147_v47  ;;  %v5216_v47 = vld [vmem:[#allocation6 + $0x600] ss:$8 sps:$4 sm:$0xff]  }
 0x3f9   :  { %2544 = vmatprep.subr.bf16.mxu0 %v5152_v49  ;;  %v5219_v49 = vld [vmem:[#allocation6 + $0x6f0] ss:$8 sps:$4 sm:$0xff]  }
 0x3fc   :  { %2545 = vmatpush1.bf16.msra.mxu0 %v5150_v50  ;;  %v5224_v50 = vld [vmem:[#allocation6 + $0x6e4] ss:$8 sps:$4 sm:$0xff]  }
 0x3fd   :  { %2546 = vmatprep.subr.bf16.mxu0 %v5155_v51  ;;  %v5222_v51 = vld [vmem:[#allocation6 + $0x6e0] ss:$8 sps:$4 sm:$0xff]  }
 0x400   :  { %2547 = vmatpush1.bf16.msra.mxu0 %v5153_v52  ;;  %v5227_v52 = vld [vmem:[#allocation6 + $0x6d4] ss:$8 sps:$4 sm:$0xff]  }
 0x401   :  { %2548 = vmatprep.subr.bf16.mxu0 %v5158_v53  ;;  %v5225_v53 = vld [vmem:[#allocation6 + $0x6d0] ss:$8 sps:$4 sm:$0xff]  }
 0x404   :  { %2549 = vmatpush1.bf16.msra.mxu0 %v5156_v54  ;;  %v2096_v54 = vld [vmem:[#allocation7 + $0x8] sm:$0x3] }
 0x405   :  { %2550 = vmatprep.subr.bf16.mxu0 %v5161_v55  ;;  %v2101_v55 = vrot.slane %v2096_v54, %v5702_v63 }
 0x408   :  { %2551 = vmatpush1.bf16.msra.mxu0 %v5159_v56  ;;  %v2105_v56 = vrot.slane %v2096_v54, %v5704_v1  ;;  %v5276_v54 = vld [vmem:[#allocation6 + $0x7c0] ss:$8 sps:$4 sm:$0xff]  }
 0x409   :  { %2552 = vmatprep.subr.bf16.mxu0 %v5164_v57 }
 0x40c   :  { %2553 = vmatpush1.bf16.msra.mxu0 %v5162_v58 }
 0x40d   :  { %2554 = vmatprep.subr.bf16.mxu0 %v5167_v59 }
 0x410   :  { %2555 = vmatpush1.bf16.msra.mxu0 %v5165_v60 }
 0x411   :  { %2556 = vmatprep.subr.bf16.mxu0 %v5170_v62 }
 0x414   :  { %2557 = vmatpush1.bf16.msra.mxu0 %v5168_v0 }
 0x415   :  { %2558 = vmatprep.subr.bf16.mxu0 %v5173_v2 }
 0x418   :  { %2559 = vmatpush2.bf16.msra.mxu0 %v5171_v3 }
 0x419   :  { %2560 = vmatprep.subr.bf16.mxu0 %v5176_v4 }
 0x41c   :  { %2561 = vmatpush2.bf16.msra.mxu0 %v5174_v5 }
 0x41d   :  { %2562 = vmatprep.subr.bf16.mxu0 %v5179_v6 }
 0x420   :  { %2563 = vmatpush2.bf16.msra.mxu0 %v5177_v7  ;;  %v5230_v7 = vld [vmem:[#allocation6 + $0x6c4] ss:$8 sps:$4 sm:$0xff]  }
 0x421   :  { %2564 = vmatprep.subr.bf16.mxu0 %v5182_v22  ;;  %v5249_v22 = vld [vmem:[#allocation6 + $0x750] ss:$8 sps:$4 sm:$0xff]  }
 0x424   :  { %2565 = vmatpush2.bf16.msra.mxu0 %v5180_v23  ;;  %v5254_v23 = vld [vmem:[#allocation6 + $0x744] ss:$8 sps:$4 sm:$0xff]  }
 0x425   :  { %2566 = vmatprep.subr.bf16.mxu0 %v5185_v24  ;;  %v5252_v24 = vld [vmem:[#allocation6 + $0x740] ss:$8 sps:$4 sm:$0xff]  }
 0x428   :  { %2567 = vmatpush2.bf16.msra.mxu0 %v5183_v25  ;;  %v5257_v25 = vld [vmem:[#allocation6 + $0x734] ss:$8 sps:$4 sm:$0xff]  }
 0x429   :  { %2568 = vmatprep.subr.bf16.mxu0 %v5188_v26  ;;  %v5255_v26 = vld [vmem:[#allocation6 + $0x730] ss:$8 sps:$4 sm:$0xff]  }
 0x42c   :  { %2569 = vmatpush2.bf16.msra.mxu0 %v5186_v27  ;;  %v5260_v27 = vld [vmem:[#allocation6 + $0x724] ss:$8 sps:$4 sm:$0xff]  }
 0x42d   :  { %2570 = vmatprep.subr.bf16.mxu0 %v5191_v28  ;;  %v5258_v28 = vld [vmem:[#allocation6 + $0x720] ss:$8 sps:$4 sm:$0xff]  }
 0x430   :  { %2571 = vmatpush2.bf16.msra.mxu0 %v5189_v29  ;;  %v5263_v29 = vld [vmem:[#allocation6 + $0x714] ss:$8 sps:$4 sm:$0xff]  }
 0x431   :  { %2572 = vmatprep.subr.bf16.mxu0 %v5194_v30  ;;  %v5261_v30 = vld [vmem:[#allocation6 + $0x710] ss:$8 sps:$4 sm:$0xff]  }
 0x434   :  { %2573 = vmatpush2.bf16.msra.mxu0 %v5192_v31  ;;  %v5266_v31 = vld [vmem:[#allocation6 + $0x704] ss:$8 sps:$4 sm:$0xff]  }
 0x4b7   :  { %v2042_v11 = vpop.f32.mrf.mxu0 }
 0x4b8   :  { %v2043_v12 = vadd.f32 %v2042_v11, %v1834_v9  ;;  %v5233_v9 = vld [vmem:[#allocation6 + $0x6b4] ss:$8 sps:$4 sm:$0xff]   ;;  %v5236_v11 = vld [vmem:[#allocation6 + $0x6a4] ss:$8 sps:$4 sm:$0xff]  }
 0x4b9   :  { %v2044_v13 = vpop.f32.mrf.mxu0 }
 0x4ba   :  { %v2045_v14 = vadd.f32 %v2044_v13, %v1838_v10  ;;  %v2049_v16 = vmax.f32 %v2043_v12, 0.0  ;;  %v5231_v10 = vld [vmem:[#allocation6 + $0x6b0] ss:$8 sps:$4 sm:$0xff]   ;;  %v5234_v12 = vld [vmem:[#allocation6 + $0x6a0] ss:$8 sps:$4 sm:$0xff]  }
 0x4bb   :  { %v2046_v15 = vpop.f32.mrf.mxu0  ;;  %v5239_v13 = vld [vmem:[#allocation6 + $0x694] ss:$8 sps:$4 sm:$0xff]  }
 0x4bc   :  { %v2050_v17 = vmax.f32 %v2045_v14, 0.0  ;;  %v5463_v20 = vpack.c.bf16 %v2049_v16, %v2049_v16  ;;  %v5237_v14 = vld [vmem:[#allocation6 + $0x690] ss:$8 sps:$4 sm:$0xff]   ;;  %v5242_v15 = vld [vmem:[#allocation6 + $0x684] ss:$8 sps:$4 sm:$0xff]  }
 0x4bd   :  { %v2047_v18 = vpop.f32.mrf.mxu0 }
 0x4be   :  { %v4689_v19 = vpack.c.bf16 %v2050_v17, %v2049_v16  ;;  %v5464_v21 = vpack.c.bf16 %v2050_v17, %v2050_v17  ;;  %v5240_v16 = vld [vmem:[#allocation6 + $0x680] ss:$8 sps:$4 sm:$0xff]   ;;  %v5243_v17 = vld [vmem:[#allocation6 + $0x770] ss:$8 sps:$4 sm:$0xff]   ;;  %v5245_v18 = vld [vmem:[#allocation6 + $0x774] ss:$8 sps:$4 sm:$0xff]  }
 0x4bf   :  { %3076 = vmatprep.subr.bf16.mxu0 %v5245_v18  ;;  %v5317_v18 = vld [vmem:[#allocation6 + $0x8f4] ss:$8 sps:$4 sm:$0xff]  }
 0x4c0   :  { %4405 = vst [vmem:[%s5777_s7 + $0x20] sm:$0xff] %v4689_v19  ;;  %2307 = vmatprep.mubr.bf16.mxu1 %v5464_v21  ;;  %v5248_v19 = vld [vmem:[#allocation6 + $0x764] ss:$8 sps:$4 sm:$0xff]   ;;  %v5251_v21 = vld [vmem:[#allocation6 + $0x754] ss:$8 sps:$4 sm:$0xff]  }
 0x4c1   :  { %2308 = vmatmul.mubr.bf16.vlgmr.msra.gmra.mxu1 %v5463_v20  ;;  %v5246_v20 = vld [vmem:[#allocation6 + $0x760] ss:$8 sps:$4 sm:$0xff]  }
 0x4c2   :  { %2810 = vmatpush1.bf16.msra.mxu1 %v5195_v32  ;;  %v5264_v32 = vld [vmem:[#allocation6 + $0x700] ss:$8 sps:$4 sm:$0xff]  }
 0x4c3   :  { %2811 = vmatprep.subr.bf16.mxu1 %v5200_v34  ;;  %v5267_v34 = vld [vmem:[#allocation6 + $0x7f0] ss:$8 sps:$4 sm:$0xff]  }
 0x4c6   :  { %2812 = vmatpush1.bf16.msra.mxu1 %v5198_v35  ;;  %v5272_v35 = vld [vmem:[#allocation6 + $0x7e4] ss:$8 sps:$4 sm:$0xff]  }
 0x4c7   :  { %2813 = vmatprep.subr.bf16.mxu1 %v5203_v36  ;;  %v5270_v36 = vld [vmem:[#allocation6 + $0x7e0] ss:$8 sps:$4 sm:$0xff]  }
 0x4ca   :  { %2814 = vmatpush1.bf16.msra.mxu1 %v5201_v37  ;;  %v5275_v37 = vld [vmem:[#allocation6 + $0x7d4] ss:$8 sps:$4 sm:$0xff]  }
 0x4cb   :  { %2815 = vmatprep.subr.bf16.mxu1 %v5206_v38  ;;  %v5273_v38 = vld [vmem:[#allocation6 + $0x7d0] ss:$8 sps:$4 sm:$0xff]  }
 0x4ce   :  { %2816 = vmatpush1.bf16.msra.mxu1 %v5204_v39  ;;  %v2363_v39 = vld [vmem:[#allocation7 + $0xa] sm:$0x3] }
 0x4cf   :  { %2817 = vmatprep.subr.bf16.mxu1 %v5209_v40  ;;  %v2368_v40 = vrot.slane %v2363_v39, %v5702_v63 }
 0x4d2   :  { %2818 = vmatpush1.bf16.msra.mxu1 %v5207_v41  ;;  %v2372_v41 = vrot.slane %v2363_v39, %v5704_v1  ;;  %v5324_v39 = vld [vmem:[#allocation6 + $0x8c0] ss:$8 sps:$4 sm:$0xff]  }
 0x4d3   :  { %2819 = vmatprep.subr.bf16.mxu1 %v5212_v42 }
 0x4d6   :  { %2820 = vmatpush1.bf16.msra.mxu1 %v5210_v43 }
 0x4d7   :  { %2821 = vmatprep.subr.bf16.mxu1 %v5215_v44 }
 0x4da   :  { %2822 = vmatpush1.bf16.msra.mxu1 %v5213_v45 }
 0x4db   :  { %2823 = vmatprep.subr.bf16.mxu1 %v5218_v46 }
 0x4de   :  { %2824 = vmatpush1.bf16.msra.mxu1 %v5216_v47 }
 0x4df   :  { %2825 = vmatprep.subr.bf16.mxu1 %v5221_v48 }
 0x4e2   :  { %2826 = vmatpush2.bf16.msra.mxu1 %v5219_v49 }
 0x4e3   :  { %2827 = vmatprep.subr.bf16.mxu1 %v5224_v50 }
 0x4e6   :  { %2828 = vmatpush2.bf16.msra.mxu1 %v5222_v51 }
 0x4e7   :  { %2829 = vmatprep.subr.bf16.mxu1 %v5227_v52 }
 0x4ea   :  { %2830 = vmatpush2.bf16.msra.mxu1 %v5225_v53  ;;  %v5278_v53 = vld [vmem:[#allocation6 + $0x7c4] ss:$8 sps:$4 sm:$0xff]  }
 0x4eb   :  { %2831 = vmatprep.subr.bf16.mxu1 %v5230_v7  ;;  %v5297_v7 = vld [vmem:[#allocation6 + $0x850] ss:$8 sps:$4 sm:$0xff]  }
 0x4ee   :  { %2832 = vmatpush2.bf16.msra.mxu1 %v5228_v8  ;;  %v5302_v8 = vld [vmem:[#allocation6 + $0x844] ss:$8 sps:$4 sm:$0xff]  }
 0x4ef   :  { %2833 = vmatprep.subr.bf16.mxu1 %v5233_v9  ;;  %v5300_v9 = vld [vmem:[#allocation6 + $0x840] ss:$8 sps:$4 sm:$0xff]  }
 0x4f2   :  { %2834 = vmatpush2.bf16.msra.mxu1 %v5231_v10  ;;  %v5305_v10 = vld [vmem:[#allocation6 + $0x834] ss:$8 sps:$4 sm:$0xff]  }
 0x4f3   :  { %2835 = vmatprep.subr.bf16.mxu1 %v5236_v11  ;;  %v5303_v11 = vld [vmem:[#allocation6 + $0x830] ss:$8 sps:$4 sm:$0xff]  }
 0x4f6   :  { %2836 = vmatpush2.bf16.msra.mxu1 %v5234_v12  ;;  %v5308_v12 = vld [vmem:[#allocation6 + $0x824] ss:$8 sps:$4 sm:$0xff]  }
 0x4f7   :  { %2837 = vmatprep.subr.bf16.mxu1 %v5239_v13  ;;  %v5306_v13 = vld [vmem:[#allocation6 + $0x820] ss:$8 sps:$4 sm:$0xff]  }
 0x4fa   :  { %2838 = vmatpush2.bf16.msra.mxu1 %v5237_v14  ;;  %v5311_v14 = vld [vmem:[#allocation6 + $0x814] ss:$8 sps:$4 sm:$0xff]  }
 0x4fb   :  { %2839 = vmatprep.subr.bf16.mxu1 %v5242_v15  ;;  %v5309_v15 = vld [vmem:[#allocation6 + $0x810] ss:$8 sps:$4 sm:$0xff]  }
 0x4fe   :  { %2840 = vmatpush2.bf16.msra.mxu1 %v5240_v16  ;;  %v5314_v16 = vld [vmem:[#allocation6 + $0x804] ss:$8 sps:$4 sm:$0xff]  }
 0x581   :  { %v2309_v57 = vpop.f32.mrf.mxu1 }
 0x582   :  { %v2310_v58 = vadd.f32 %v2309_v57, %v2101_v55  ;;  %v5281_v55 = vld [vmem:[#allocation6 + $0x7b4] ss:$8 sps:$4 sm:$0xff]   ;;  %v5284_v57 = vld [vmem:[#allocation6 + $0x7a4] ss:$8 sps:$4 sm:$0xff]  }
 0x583   :  { %v2311_v59 = vpop.f32.mrf.mxu1 }
 0x584   :  { %v2312_v60 = vadd.f32 %v2311_v59, %v2105_v56  ;;  %v2316_v0 = vmax.f32 %v2310_v58, 0.0  ;;  %v5279_v56 = vld [vmem:[#allocation6 + $0x7b0] ss:$8 sps:$4 sm:$0xff]   ;;  %v5282_v58 = vld [vmem:[#allocation6 + $0x7a0] ss:$8 sps:$4 sm:$0xff]  }
 0x585   :  { %v2313_v62 = vpop.f32.mrf.mxu1  ;;  %v5287_v59 = vld [vmem:[#allocation6 + $0x794] ss:$8 sps:$4 sm:$0xff]  }
 0x586   :  { %v2317_v2 = vmax.f32 %v2312_v60, 0.0  ;;  %v5465_v5 = vpack.c.bf16 %v2316_v0, %v2316_v0  ;;  %v5285_v60 = vld [vmem:[#allocation6 + $0x790] ss:$8 sps:$4 sm:$0xff]   ;;  %v5290_v62 = vld [vmem:[#allocation6 + $0x784] ss:$8 sps:$4 sm:$0xff]  }
 0x587   :  { %v2314_v3 = vpop.f32.mrf.mxu1 }
 0x588   :  { %v4690_v4 = vpack.c.bf16 %v2317_v2, %v2316_v0  ;;  %v5466_v6 = vpack.c.bf16 %v2317_v2, %v2317_v2  ;;  %v5288_v0 = vld [vmem:[#allocation6 + $0x780] ss:$8 sps:$4 sm:$0xff]   ;;  %v5291_v2 = vld [vmem:[#allocation6 + $0x870] ss:$8 sps:$4 sm:$0xff]   ;;  %v5293_v3 = vld [vmem:[#allocation6 + $0x874] ss:$8 sps:$4 sm:$0xff]  }
 0x589   :  { %3343 = vmatprep.subr.bf16.mxu1 %v5293_v3  ;;  %v5365_v3 = vld [vmem:[#allocation6 + $0x9f4] ss:$8 sps:$4 sm:$0xff]  }
 0x58a   :  { %4442 = vst [vmem:[%s5777_s7 + $0x28] sm:$0xff] %v4690_v4  ;;  %2574 = vmatprep.mubr.bf16.mxu0 %v5466_v6  ;;  %v5296_v4 = vld [vmem:[#allocation6 + $0x864] ss:$8 sps:$4 sm:$0xff]   ;;  %v5299_v6 = vld [vmem:[#allocation6 + $0x854] ss:$8 sps:$4 sm:$0xff]  }
 0x58b   :  { %2575 = vmatmul.mubr.bf16.vlgmr.msra.gmra.mxu0 %v5465_v5  ;;  %v5294_v5 = vld [vmem:[#allocation6 + $0x860] ss:$8 sps:$4 sm:$0xff]  }
 0x58c   :  { %3077 = vmatpush1.bf16.msra.mxu0 %v5243_v17  ;;  %v5312_v17 = vld [vmem:[#allocation6 + $0x800] ss:$8 sps:$4 sm:$0xff]  }
 0x58d   :  { %3078 = vmatprep.subr.bf16.mxu0 %v5248_v19  ;;  %v5315_v19 = vld [vmem:[#allocation6 + $0x8f0] ss:$8 sps:$4 sm:$0xff]  }
 0x590   :  { %3079 = vmatpush1.bf16.msra.mxu0 %v5246_v20  ;;  %v5320_v20 = vld [vmem:[#allocation6 + $0x8e4] ss:$8 sps:$4 sm:$0xff]  }
 0x591   :  { %3080 = vmatprep.subr.bf16.mxu0 %v5251_v21  ;;  %v5318_v21 = vld [vmem:[#allocation6 + $0x8e0] ss:$8 sps:$4 sm:$0xff]  }
 0x594   :  { %3081 = vmatpush1.bf16.msra.mxu0 %v5249_v22  ;;  %v5323_v22 = vld [vmem:[#allocation6 + $0x8d4] ss:$8 sps:$4 sm:$0xff]  }
 0x595   :  { %3082 = vmatprep.subr.bf16.mxu0 %v5254_v23  ;;  %v5321_v23 = vld [vmem:[#allocation6 + $0x8d0] ss:$8 sps:$4 sm:$0xff]  }
 0x598   :  { %3083 = vmatpush1.bf16.msra.mxu0 %v5252_v24  ;;  %v2630_v24 = vld [vmem:[#allocation7 + $0xc] sm:$0x3] }
 0x599   :  { %3084 = vmatprep.subr.bf16.mxu0 %v5257_v25  ;;  %v2635_v25 = vrot.slane %v2630_v24, %v5702_v63 }
 0x59c   :  { %3085 = vmatpush1.bf16.msra.mxu0 %v5255_v26  ;;  %v2639_v26 = vrot.slane %v2630_v24, %v5704_v1  ;;  %v5372_v24 = vld [vmem:[#allocation6 + $0x9c0] ss:$8 sps:$4 sm:$0xff]  }
 0x59d   :  { %3086 = vmatprep.subr.bf16.mxu0 %v5260_v27 }
 0x5a0   :  { %3087 = vmatpush1.bf16.msra.mxu0 %v5258_v28 }
 0x5a1   :  { %3088 = vmatprep.subr.bf16.mxu0 %v5263_v29 }
 0x5a4   :  { %3089 = vmatpush1.bf16.msra.mxu0 %v5261_v30 }
 0x5a5   :  { %3090 = vmatprep.subr.bf16.mxu0 %v5266_v31 }
 0x5a8   :  { %3091 = vmatpush1.bf16.msra.mxu0 %v5264_v32 }
 0x5a9   :  { %3092 = vmatprep.subr.bf16.mxu0 %v5269_v33 }
 0x5ac   :  { %3093 = vmatpush2.bf16.msra.mxu0 %v5267_v34 }
 0x5ad   :  { %3094 = vmatprep.subr.bf16.mxu0 %v5272_v35 }
 0x5b0   :  { %3095 = vmatpush2.bf16.msra.mxu0 %v5270_v36 }
 0x5b1   :  { %3096 = vmatprep.subr.bf16.mxu0 %v5275_v37 }
 0x5b4   :  { %3097 = vmatpush2.bf16.msra.mxu0 %v5273_v38  ;;  %v5326_v38 = vld [vmem:[#allocation6 + $0x8c4] ss:$8 sps:$4 sm:$0xff]  }
 0x5b5   :  { %3098 = vmatprep.subr.bf16.mxu0 %v5278_v53  ;;  %v5345_v53 = vld [vmem:[#allocation6 + $0x950] ss:$8 sps:$4 sm:$0xff]  }
 0x5b8   :  { %3099 = vmatpush2.bf16.msra.mxu0 %v5276_v54  ;;  %v5350_v54 = vld [vmem:[#allocation6 + $0x944] ss:$8 sps:$4 sm:$0xff]  }
 0x5b9   :  { %3100 = vmatprep.subr.bf16.mxu0 %v5281_v55  ;;  %v5348_v55 = vld [vmem:[#allocation6 + $0x940] ss:$8 sps:$4 sm:$0xff]  }
 0x5bc   :  { %3101 = vmatpush2.bf16.msra.mxu0 %v5279_v56  ;;  %v5353_v56 = vld [vmem:[#allocation6 + $0x934] ss:$8 sps:$4 sm:$0xff]  }
 0x5bd   :  { %3102 = vmatprep.subr.bf16.mxu0 %v5284_v57  ;;  %v5351_v57 = vld [vmem:[#allocation6 + $0x930] ss:$8 sps:$4 sm:$0xff]  }
 0x5c0   :  { %3103 = vmatpush2.bf16.msra.mxu0 %v5282_v58  ;;  %v5356_v58 = vld [vmem:[#allocation6 + $0x924] ss:$8 sps:$4 sm:$0xff]  }
 0x5c1   :  { %3104 = vmatprep.subr.bf16.mxu0 %v5287_v59  ;;  %v5354_v59 = vld [vmem:[#allocation6 + $0x920] ss:$8 sps:$4 sm:$0xff]  }
 0x5c4   :  { %3105 = vmatpush2.bf16.msra.mxu0 %v5285_v60  ;;  %v5359_v60 = vld [vmem:[#allocation6 + $0x914] ss:$8 sps:$4 sm:$0xff]  }
 0x5c5   :  { %3106 = vmatprep.subr.bf16.mxu0 %v5290_v62  ;;  %v5357_v62 = vld [vmem:[#allocation6 + $0x910] ss:$8 sps:$4 sm:$0xff]  }
 0x5c8   :  { %3107 = vmatpush2.bf16.msra.mxu0 %v5288_v0  ;;  %v5362_v0 = vld [vmem:[#allocation6 + $0x904] ss:$8 sps:$4 sm:$0xff]  }
 0x64b   :  { %v2576_v42 = vpop.f32.mrf.mxu0 }
 0x64c   :  { %v2577_v43 = vadd.f32 %v2576_v42, %v2368_v40  ;;  %v5329_v40 = vld [vmem:[#allocation6 + $0x8b4] ss:$8 sps:$4 sm:$0xff]   ;;  %v5332_v42 = vld [vmem:[#allocation6 + $0x8a4] ss:$8 sps:$4 sm:$0xff]  }
 0x64d   :  { %v2578_v44 = vpop.f32.mrf.mxu0 }
 0x64e   :  { %v2579_v45 = vadd.f32 %v2578_v44, %v2372_v41  ;;  %v2583_v47 = vmax.f32 %v2577_v43, 0.0  ;;  %v5327_v41 = vld [vmem:[#allocation6 + $0x8b0] ss:$8 sps:$4 sm:$0xff]   ;;  %v5330_v43 = vld [vmem:[#allocation6 + $0x8a0] ss:$8 sps:$4 sm:$0xff]  }
 0x64f   :  { %v2580_v46 = vpop.f32.mrf.mxu0  ;;  %v5335_v44 = vld [vmem:[#allocation6 + $0x894] ss:$8 sps:$4 sm:$0xff]  }
 0x650   :  { %v2584_v48 = vmax.f32 %v2579_v45, 0.0  ;;  %v5467_v51 = vpack.c.bf16 %v2583_v47, %v2583_v47  ;;  %v5333_v45 = vld [vmem:[#allocation6 + $0x890] ss:$8 sps:$4 sm:$0xff]   ;;  %v5338_v46 = vld [vmem:[#allocation6 + $0x884] ss:$8 sps:$4 sm:$0xff]  }
 0x651   :  { %v2581_v49 = vpop.f32.mrf.mxu0 }
 0x652   :  { %v4691_v50 = vpack.c.bf16 %v2584_v48, %v2583_v47  ;;  %v5468_v52 = vpack.c.bf16 %v2584_v48, %v2584_v48  ;;  %v5336_v47 = vld [vmem:[#allocation6 + $0x880] ss:$8 sps:$4 sm:$0xff]   ;;  %v5339_v48 = vld [vmem:[#allocation6 + $0x970] ss:$8 sps:$4 sm:$0xff]   ;;  %v5341_v49 = vld [vmem:[#allocation6 + $0x974] ss:$8 sps:$4 sm:$0xff]  }
 0x653   :  { %3610 = vmatprep.subr.bf16.mxu0 %v5341_v49  ;;  %v5413_v49 = vld [vmem:[#allocation6 + $0xaf4] ss:$8 sps:$4 sm:$0xff]  }
 0x654   :  { %4479 = vst [vmem:[%s5777_s7 + $0x30] sm:$0xff] %v4691_v50  ;;  %2841 = vmatprep.mubr.bf16.mxu1 %v5468_v52  ;;  %v5344_v50 = vld [vmem:[#allocation6 + $0x964] ss:$8 sps:$4 sm:$0xff]   ;;  %v5347_v52 = vld [vmem:[#allocation6 + $0x954] ss:$8 sps:$4 sm:$0xff]  }
 0x655   :  { %2842 = vmatmul.mubr.bf16.vlgmr.msra.gmra.mxu1 %v5467_v51  ;;  %v5342_v51 = vld [vmem:[#allocation6 + $0x960] ss:$8 sps:$4 sm:$0xff]  }
 0x656   :  { %3344 = vmatpush1.bf16.msra.mxu1 %v5291_v2  ;;  %v5360_v2 = vld [vmem:[#allocation6 + $0x900] ss:$8 sps:$4 sm:$0xff]  }
 0x657   :  { %3345 = vmatprep.subr.bf16.mxu1 %v5296_v4  ;;  %v5363_v4 = vld [vmem:[#allocation6 + $0x9f0] ss:$8 sps:$4 sm:$0xff]  }
 0x65a   :  { %3346 = vmatpush1.bf16.msra.mxu1 %v5294_v5  ;;  %v5368_v5 = vld [vmem:[#allocation6 + $0x9e4] ss:$8 sps:$4 sm:$0xff]  }
 0x65b   :  { %3347 = vmatprep.subr.bf16.mxu1 %v5299_v6  ;;  %v5366_v6 = vld [vmem:[#allocation6 + $0x9e0] ss:$8 sps:$4 sm:$0xff]  }
 0x65e   :  { %3348 = vmatpush1.bf16.msra.mxu1 %v5297_v7  ;;  %v5371_v7 = vld [vmem:[#allocation6 + $0x9d4] ss:$8 sps:$4 sm:$0xff]  }
 0x65f   :  { %3349 = vmatprep.subr.bf16.mxu1 %v5302_v8  ;;  %v5369_v8 = vld [vmem:[#allocation6 + $0x9d0] ss:$8 sps:$4 sm:$0xff]  }
 0x662   :  { %3350 = vmatpush1.bf16.msra.mxu1 %v5300_v9  ;;  %v2897_v9 = vld [vmem:[#allocation7 + $0xe] sm:$0x3] }
 0x663   :  { %3351 = vmatprep.subr.bf16.mxu1 %v5305_v10  ;;  %v2902_v10 = vrot.slane %v2897_v9, %v5702_v63 }
 0x666   :  { %3352 = vmatpush1.bf16.msra.mxu1 %v5303_v11  ;;  %v2906_v11 = vrot.slane %v2897_v9, %v5704_v1  ;;  %v5420_v9 = vld [vmem:[#allocation6 + $0xac0] ss:$8 sps:$4 sm:$0xff]  }
 0x667   :  { %3353 = vmatprep.subr.bf16.mxu1 %v5308_v12 }
 0x66a   :  { %3354 = vmatpush1.bf16.msra.mxu1 %v5306_v13 }
 0x66b   :  { %3355 = vmatprep.subr.bf16.mxu1 %v5311_v14 }
 0x66e   :  { %3356 = vmatpush1.bf16.msra.mxu1 %v5309_v15 }
 0x66f   :  { %3357 = vmatprep.subr.bf16.mxu1 %v5314_v16 }
 0x672   :  { %3358 = vmatpush1.bf16.msra.mxu1 %v5312_v17 }
 0x673   :  { %3359 = vmatprep.subr.bf16.mxu1 %v5317_v18 }
 0x676   :  { %3360 = vmatpush2.bf16.msra.mxu1 %v5315_v19 }
 0x677   :  { %3361 = vmatprep.subr.bf16.mxu1 %v5320_v20 }
 0x67a   :  { %3362 = vmatpush2.bf16.msra.mxu1 %v5318_v21 }
 0x67b   :  { %3363 = vmatprep.subr.bf16.mxu1 %v5323_v22 }
 0x67e   :  { %3364 = vmatpush2.bf16.msra.mxu1 %v5321_v23  ;;  %v5374_v23 = vld [vmem:[#allocation6 + $0x9c4] ss:$8 sps:$4 sm:$0xff]  }
 0x67f   :  { %3365 = vmatprep.subr.bf16.mxu1 %v5326_v38  ;;  %v5393_v38 = vld [vmem:[#allocation6 + $0xa50] ss:$8 sps:$4 sm:$0xff]  }
 0x682   :  { %3366 = vmatpush2.bf16.msra.mxu1 %v5324_v39  ;;  %v5398_v39 = vld [vmem:[#allocation6 + $0xa44] ss:$8 sps:$4 sm:$0xff]  }
 0x683   :  { %3367 = vmatprep.subr.bf16.mxu1 %v5329_v40  ;;  %v5396_v40 = vld [vmem:[#allocation6 + $0xa40] ss:$8 sps:$4 sm:$0xff]  }
 0x686   :  { %3368 = vmatpush2.bf16.msra.mxu1 %v5327_v41  ;;  %v5401_v41 = vld [vmem:[#allocation6 + $0xa34] ss:$8 sps:$4 sm:$0xff]  }
 0x687   :  { %3369 = vmatprep.subr.bf16.mxu1 %v5332_v42  ;;  %v5399_v42 = vld [vmem:[#allocation6 + $0xa30] ss:$8 sps:$4 sm:$0xff]  }
 0x68a   :  { %3370 = vmatpush2.bf16.msra.mxu1 %v5330_v43  ;;  %v5404_v43 = vld [vmem:[#allocation6 + $0xa24] ss:$8 sps:$4 sm:$0xff]  }
 0x68b   :  { %3371 = vmatprep.subr.bf16.mxu1 %v5335_v44  ;;  %v5402_v44 = vld [vmem:[#allocation6 + $0xa20] ss:$8 sps:$4 sm:$0xff]  }
 0x68e   :  { %3372 = vmatpush2.bf16.msra.mxu1 %v5333_v45  ;;  %v5407_v45 = vld [vmem:[#allocation6 + $0xa14] ss:$8 sps:$4 sm:$0xff]  }
 0x68f   :  { %3373 = vmatprep.subr.bf16.mxu1 %v5338_v46  ;;  %v5405_v46 = vld [vmem:[#allocation6 + $0xa10] ss:$8 sps:$4 sm:$0xff]  }
 0x692   :  { %3374 = vmatpush2.bf16.msra.mxu1 %v5336_v47  ;;  %v5410_v47 = vld [vmem:[#allocation6 + $0xa04] ss:$8 sps:$4 sm:$0xff]  }
 0x715   :  { %v2843_v27 = vpop.f32.mrf.mxu1 }
 0x716   :  { %v2844_v28 = vadd.f32 %v2843_v27, %v2635_v25  ;;  %v5377_v25 = vld [vmem:[#allocation6 + $0x9b4] ss:$8 sps:$4 sm:$0xff]   ;;  %v5380_v27 = vld [vmem:[#allocation6 + $0x9a4] ss:$8 sps:$4 sm:$0xff]  }
 0x717   :  { %v2845_v29 = vpop.f32.mrf.mxu1 }
 0x718   :  { %v2846_v30 = vadd.f32 %v2845_v29, %v2639_v26  ;;  %v2850_v32 = vmax.f32 %v2844_v28, 0.0  ;;  %v5375_v26 = vld [vmem:[#allocation6 + $0x9b0] ss:$8 sps:$4 sm:$0xff]   ;;  %v5378_v28 = vld [vmem:[#allocation6 + $0x9a0] ss:$8 sps:$4 sm:$0xff]  }
 0x719   :  { %v2847_v31 = vpop.f32.mrf.mxu1  ;;  %v5383_v29 = vld [vmem:[#allocation6 + $0x994] ss:$8 sps:$4 sm:$0xff]  }
 0x71a   :  { %v2851_v33 = vmax.f32 %v2846_v30, 0.0  ;;  %v5469_v36 = vpack.c.bf16 %v2850_v32, %v2850_v32  ;;  %v5381_v30 = vld [vmem:[#allocation6 + $0x990] ss:$8 sps:$4 sm:$0xff]   ;;  %v5386_v31 = vld [vmem:[#allocation6 + $0x984] ss:$8 sps:$4 sm:$0xff]  }
 0x71b   :  { %v2848_v34 = vpop.f32.mrf.mxu1 }
 0x71c   :  { %v4692_v35 = vpack.c.bf16 %v2851_v33, %v2850_v32  ;;  %v5470_v37 = vpack.c.bf16 %v2851_v33, %v2851_v33  ;;  %v5384_v32 = vld [vmem:[#allocation6 + $0x980] ss:$8 sps:$4 sm:$0xff]   ;;  %v5387_v33 = vld [vmem:[#allocation6 + $0xa70] ss:$8 sps:$4 sm:$0xff]   ;;  %v5389_v34 = vld [vmem:[#allocation6 + $0xa74] ss:$8 sps:$4 sm:$0xff]  }
 0x71d   :  { %3877 = vmatprep.subr.bf16.mxu1 %v5389_v34 }
 0x71e   :  { %4516 = vst [vmem:[%s5777_s7 + $0x38] sm:$0xff] %v4692_v35  ;;  %3108 = vmatprep.mubr.bf16.mxu0 %v5470_v37  ;;  %v5392_v35 = vld [vmem:[#allocation6 + $0xa64] ss:$8 sps:$4 sm:$0xff]   ;;  %v5395_v37 = vld [vmem:[#allocation6 + $0xa54] ss:$8 sps:$4 sm:$0xff]  }
 0x71f   :  { %3109 = vmatmul.mubr.bf16.vlgmr.msra.gmra.mxu0 %v5469_v36  ;;  %v5390_v36 = vld [vmem:[#allocation6 + $0xa60] ss:$8 sps:$4 sm:$0xff]  }
 0x720   :  { %3611 = vmatpush1.bf16.msra.mxu0 %v5339_v48  ;;  %v5408_v48 = vld [vmem:[#allocation6 + $0xa00] ss:$8 sps:$4 sm:$0xff]  }
 0x721   :  { %3612 = vmatprep.subr.bf16.mxu0 %v5344_v50  ;;  %v5411_v50 = vld [vmem:[#allocation6 + $0xaf0] ss:$8 sps:$4 sm:$0xff]  }
 0x724   :  { %3613 = vmatpush1.bf16.msra.mxu0 %v5342_v51  ;;  %v5416_v51 = vld [vmem:[#allocation6 + $0xae4] ss:$8 sps:$4 sm:$0xff]  }
 0x725   :  { %3614 = vmatprep.subr.bf16.mxu0 %v5347_v52  ;;  %v5414_v52 = vld [vmem:[#allocation6 + $0xae0] ss:$8 sps:$4 sm:$0xff]  }
 0x728   :  { %3615 = vmatpush1.bf16.msra.mxu0 %v5345_v53  ;;  %v5419_v53 = vld [vmem:[#allocation6 + $0xad4] ss:$8 sps:$4 sm:$0xff]  }
 0x729   :  { %3616 = vmatprep.subr.bf16.mxu0 %v5350_v54  ;;  %v5417_v54 = vld [vmem:[#allocation6 + $0xad0] ss:$8 sps:$4 sm:$0xff]  }
 0x72c   :  { %3617 = vmatpush1.bf16.msra.mxu0 %v5348_v55  ;;  %v3164_v55 = vld [vmem:[#allocation7 + $0x10] sm:$0x3] }
 0x72d   :  { %3618 = vmatprep.subr.bf16.mxu0 %v5353_v56  ;;  %v3169_v56 = vrot.slane %v3164_v55, %v5702_v63 }
 0x730   :  { %3619 = vmatpush1.bf16.msra.mxu0 %v5351_v57  ;;  %v3173_v57 = vrot.slane %v3164_v55, %v5704_v1 }
 0x731   :  { %3620 = vmatprep.subr.bf16.mxu0 %v5356_v58 }
 0x734   :  { %3621 = vmatpush1.bf16.msra.mxu0 %v5354_v59 }
 0x735   :  { %3622 = vmatprep.subr.bf16.mxu0 %v5359_v60 }
 0x738   :  { %3623 = vmatpush1.bf16.msra.mxu0 %v5357_v62 }
 0x739   :  { %3624 = vmatprep.subr.bf16.mxu0 %v5362_v0 }
 0x73c   :  { %3625 = vmatpush1.bf16.msra.mxu0 %v5360_v2 }
 0x73d   :  { %3626 = vmatprep.subr.bf16.mxu0 %v5365_v3 }
 0x740   :  { %3627 = vmatpush2.bf16.msra.mxu0 %v5363_v4 }
 0x741   :  { %3628 = vmatprep.subr.bf16.mxu0 %v5368_v5 }
 0x744   :  { %3629 = vmatpush2.bf16.msra.mxu0 %v5366_v6 }
 0x745   :  { %3630 = vmatprep.subr.bf16.mxu0 %v5371_v7 }
 0x748   :  { %3631 = vmatpush2.bf16.msra.mxu0 %v5369_v8  ;;  %v5422_v8 = vld [vmem:[#allocation6 + $0xac4] ss:$8 sps:$4 sm:$0xff]  }
 0x749   :  { %3632 = vmatprep.subr.bf16.mxu0 %v5374_v23  ;;  %v5440_v23 = vld [vmem:[#allocation9 + $0x28] sm:$0xff]  }
 0x74c   :  { %3633 = vmatpush2.bf16.msra.mxu0 %v5372_v24  ;;  %v3431_v24 = vld [vmem:[#allocation7 + $0x12] sm:$0x3] }
 0x74d   :  { %3634 = vmatprep.subr.bf16.mxu0 %v5377_v25  ;;  %v3436_v25 = vrot.slane %v3431_v24, %v5702_v63 }
 0x750   :  { %3635 = vmatpush2.bf16.msra.mxu0 %v5375_v26  ;;  %v3440_v26 = vrot.slane %v3431_v24, %v5704_v1 }
 0x751   :  { %3636 = vmatprep.subr.bf16.mxu0 %v5380_v27 }
 0x754   :  { %3637 = vmatpush2.bf16.msra.mxu0 %v5378_v28 }
 0x755   :  { %3638 = vmatprep.subr.bf16.mxu0 %v5383_v29 }
 0x758   :  { %3639 = vmatpush2.bf16.msra.mxu0 %v5381_v30 }
 0x759   :  { %3640 = vmatprep.subr.bf16.mxu0 %v5386_v31 }
 0x75c   :  { %3641 = vmatpush2.bf16.msra.mxu0 %v5384_v32 }
 0x7df   :  { %v3110_v12 = vpop.f32.mrf.mxu0 }
 0x7e0   :  { %v3111_v13 = vadd.f32 %v3110_v12, %v2902_v10  ;;  %v5425_v10 = vld [vmem:[#allocation6 + $0xab4] ss:$8 sps:$4 sm:$0xff]   ;;  %v5428_v12 = vld [vmem:[#allocation6 + $0xaa4] ss:$8 sps:$4 sm:$0xff]  }
 0x7e1   :  { %v3112_v14 = vpop.f32.mrf.mxu0 }
 0x7e2   :  { %v3113_v15 = vadd.f32 %v3112_v14, %v2906_v11  ;;  %v3117_v17 = vmax.f32 %v3111_v13, 0.0  ;;  %v5423_v11 = vld [vmem:[#allocation6 + $0xab0] ss:$8 sps:$4 sm:$0xff]   ;;  %v5426_v13 = vld [vmem:[#allocation6 + $0xaa0] ss:$8 sps:$4 sm:$0xff]  }
 0x7e3   :  { %v3114_v16 = vpop.f32.mrf.mxu0  ;;  %v5431_v14 = vld [vmem:[#allocation6 + $0xa94] ss:$8 sps:$4 sm:$0xff]  }
 0x7e4   :  { %v3118_v18 = vmax.f32 %v3113_v15, 0.0  ;;  %v5471_v21 = vpack.c.bf16 %v3117_v17, %v3117_v17  ;;  %v5429_v15 = vld [vmem:[#allocation6 + $0xa90] ss:$8 sps:$4 sm:$0xff]   ;;  %v5434_v16 = vld [vmem:[#allocation6 + $0xa84] ss:$8 sps:$4 sm:$0xff]  }
 0x7e5   :  { %v3115_v19 = vpop.f32.mrf.mxu0 }
 0x7e6   :  { %v4693_v20 = vpack.c.bf16 %v3118_v18, %v3117_v17  ;;  %v5472_v22 = vpack.c.bf16 %v3118_v18, %v3118_v18  ;;  %v5432_v17 = vld [vmem:[#allocation6 + $0xa80] ss:$8 sps:$4 sm:$0xff]   ;;  %v5435_v18 = vld [vmem:[#allocation9 + $0x78] sm:$0xff]  }
 0x7e7   :  { %v5436_v19 = vld [vmem:[#allocation9 + $0x38] sm:$0xff]   ;;  %4697 = vmatprep.subr.bf16.mxu0 %v5435_v18 }
 0x7e8   :  { %4553 = vst [vmem:[%s5777_s7 + $0x40] sm:$0xff] %v4693_v20  ;;  %3375 = vmatprep.mubr.bf16.mxu1 %v5472_v22  ;;  %v5437_v20 = vld [vmem:[#allocation9 + $0x70] sm:$0xff]   ;;  %v5439_v22 = vld [vmem:[#allocation9 + $0x68] sm:$0xff]  }
 0x7e9   :  { %3376 = vmatmul.mubr.bf16.vlgmr.msra.gmra.mxu1 %v5471_v21  ;;  %v5438_v21 = vld [vmem:[#allocation9 + $0x30] sm:$0xff]  }
 0x7ea   :  { %3878 = vmatpush1.bf16.msra.mxu1 %v5387_v33 }
 0x7eb   :  { %3879 = vmatprep.subr.bf16.mxu1 %v5392_v35 }
 0x7ee   :  { %3880 = vmatpush1.bf16.msra.mxu1 %v5390_v36 }
 0x7ef   :  { %3881 = vmatprep.subr.bf16.mxu1 %v5395_v37 }
 0x7f2   :  { %3882 = vmatpush1.bf16.msra.mxu1 %v5393_v38  ;;  %v5441_v38 = vld [vmem:[#allocation9 + $0x60] sm:$0xff]  }
 0x7f3   :  { %3883 = vmatprep.subr.bf16.mxu1 %v5398_v39  ;;  %v5442_v39 = vld [vmem:[#allocation9 + $0x20] sm:$0xff]  }
 0x7f6   :  { %3884 = vmatpush1.bf16.msra.mxu1 %v5396_v40  ;;  %v5443_v40 = vld [vmem:[#allocation9 + $0x58] sm:$0xff]  }
 0x7f7   :  { %3885 = vmatprep.subr.bf16.mxu1 %v5401_v41  ;;  %v5444_v41 = vld [vmem:[#allocation9 + $0x18] sm:$0xff]  }
 0x7fa   :  { %3886 = vmatpush1.bf16.msra.mxu1 %v5399_v42  ;;  %v5445_v42 = vld [vmem:[#allocation9 + $0x50] sm:$0xff]  }
 0x7fb   :  { %3887 = vmatprep.subr.bf16.mxu1 %v5404_v43  ;;  %v5446_v43 = vld [vmem:[#allocation9 + $0x10] sm:$0xff]  }
 0x7fe   :  { %3888 = vmatpush1.bf16.msra.mxu1 %v5402_v44  ;;  %v5447_v44 = vld [vmem:[#allocation9 + $0x48] sm:$0xff]  }
 0x7ff   :  { %3889 = vmatprep.subr.bf16.mxu1 %v5407_v45  ;;  %v5448_v45 = vld [vmem:[#allocation9 + $0x8] sm:$0xff]  }
 0x802   :  { %3890 = vmatpush1.bf16.msra.mxu1 %v5405_v46  ;;  %v5449_v46 = vld [vmem:[#allocation9 + $0x40] sm:$0xff]  }
 0x803   :  { %3891 = vmatprep.subr.bf16.mxu1 %v5410_v47  ;;  %v5450_v47 = vld [vmem:[#allocation9] sm:$0xff]  }
 0x806   :  { %3892 = vmatpush1.bf16.msra.mxu1 %v5408_v48  ;;  %v3698_v48 = vld [vmem:[#allocation7 + $0x14] sm:$0x3] }
 0x807   :  { %3893 = vmatprep.subr.bf16.mxu1 %v5413_v49  ;;  %v3703_v49 = vrot.slane %v3698_v48, %v5702_v63 }
 0x80a   :  { %3894 = vmatpush2.bf16.msra.mxu1 %v5411_v50  ;;  %v3707_v50 = vrot.slane %v3698_v48, %v5704_v1  ;;  %v4114_v1 = vand.u32 127, %v225_v61 }
 0x80b   :  { %3895 = vmatprep.subr.bf16.mxu1 %v5416_v51 }
 0x80c   :  { %vm4115_vm0 = vcmp.lt.s32.totalorder %v4114_v1, 10 }
 0x80e   :  { %3896 = vmatpush2.bf16.msra.mxu1 %v5414_v52 }
 0x80f   :  { %3897 = vmatprep.subr.bf16.mxu1 %v5419_v53 }
 0x812   :  { %3898 = vmatpush2.bf16.msra.mxu1 %v5417_v54 }
 0x813   :  { %3899 = vmatprep.subr.bf16.mxu1 %v5422_v8 }
 0x816   :  { %3900 = vmatpush2.bf16.msra.mxu1 %v5420_v9 }
 0x817   :  { %3901 = vmatprep.subr.bf16.mxu1 %v5425_v10 }
 0x81a   :  { %3902 = vmatpush2.bf16.msra.mxu1 %v5423_v11 }
 0x81b   :  { %3903 = vmatprep.subr.bf16.mxu1 %v5428_v12 }
 0x81e   :  { %3904 = vmatpush2.bf16.msra.mxu1 %v5426_v13 }
 0x81f   :  { %3905 = vmatprep.subr.bf16.mxu1 %v5431_v14 }
 0x822   :  { %3906 = vmatpush2.bf16.msra.mxu1 %v5429_v15 }
 0x823   :  { %3907 = vmatprep.subr.bf16.mxu1 %v5434_v16 }
 0x826   :  { %3908 = vmatpush2.bf16.msra.mxu1 %v5432_v17 }
 0x8a9   :  { %v3377_v58 = vpop.f32.mrf.mxu1 }
 0x8aa   :  { %v3378_v59 = vadd.f32 %v3377_v58, %v3169_v56 }
 0x8ab   :  { %v3379_v60 = vpop.f32.mrf.mxu1 }
 0x8ac   :  { %v3380_v62 = vadd.f32 %v3379_v60, %v3173_v57  ;;  %v3384_v2 = vmax.f32 %v3378_v59, 0.0 }
 0x8ad   :  { %v3381_v0 = vpop.f32.mrf.mxu1 }
 0x8ae   :  { %v3385_v3 = vmax.f32 %v3380_v62, 0.0  ;;  %v5473_v6 = vpack.c.bf16 %v3384_v2, %v3384_v2 }
 0x8af   :  { %v3382_v4 = vpop.f32.mrf.mxu1 }
 0x8b0   :  { %v4694_v5 = vpack.c.bf16 %v3385_v3, %v3384_v2  ;;  %v5474_v7 = vpack.c.bf16 %v3385_v3, %v3385_v3  ;;  %v4666_v2 = vld [vmem:[#allocation10] ss:$0 sm:$0xff] }
 0x8b2   :  { %4590 = vst [vmem:[%s5777_s7 + $0x48] sm:$0xff] %v4694_v5  ;;  %3642 = vmatprep.mubr.bf16.mxu0 %v5474_v7 }
 0x8b3   :  { %3643 = vmatmul.mubr.bf16.vlgmr.msra.gmra.mxu0 %v5473_v6 }
 0x8b4   :  { %4698 = vmatpush3.bf16.msra.mxu0 %v5436_v19 }
 0x8b5   :  { %4699 = vmatprep.subr.bf16.mxu0 %v5437_v20 }
 0x8b8   :  { %4700 = vmatpush3.bf16.msra.mxu0 %v5438_v21 }
 0x8b9   :  { %4701 = vmatprep.subr.bf16.mxu0 %v5439_v22 }
 0x8bc   :  { %4702 = vmatpush3.bf16.msra.mxu0 %v5440_v23 }
 0x8bd   :  { %4703 = vmatprep.subr.bf16.mxu0 %v5441_v38 }
 0x8c0   :  { %4704 = vmatpush3.bf16.msra.mxu0 %v5442_v39 }
 0x8c1   :  { %4705 = vmatprep.subr.bf16.mxu0 %v5443_v40 }
 0x8c4   :  { %4706 = vmatpush3.bf16.msra.mxu0 %v5444_v41 }
 0x8c5   :  { %4707 = vmatprep.subr.bf16.mxu0 %v5445_v42 }
 0x8c8   :  { %4708 = vmatpush3.bf16.msra.mxu0 %v5446_v43 }
 0x8c9   :  { %4709 = vmatprep.subr.bf16.mxu0 %v5447_v44 }
 0x8cc   :  { %4710 = vmatpush3.bf16.msra.mxu0 %v5448_v45 }
 0x8cd   :  { %4711 = vmatprep.subr.bf16.mxu0 %v5449_v46 }
 0x8d0   :  { %4712 = vmatpush3.bf16.msra.mxu0 %v5450_v47 }
 0x973   :  { %v3644_v27 = vpop.f32.mrf.mxu0 }
 0x974   :  { %v3645_v28 = vadd.f32 %v3644_v27, %v3436_v25 }
 0x975   :  { %v3646_v29 = vpop.f32.mrf.mxu0 }
 0x976   :  { %v3647_v30 = vadd.f32 %v3646_v29, %v3440_v26  ;;  %v3651_v32 = vmax.f32 %v3645_v28, 0.0 }
 0x977   :  { %v3648_v31 = vpop.f32.mrf.mxu0 }
 0x978   :  { %v3652_v33 = vmax.f32 %v3647_v30, 0.0  ;;  %v5475_v36 = vpack.c.bf16 %v3651_v32, %v3651_v32 }
 0x979   :  { %v3649_v34 = vpop.f32.mrf.mxu0 }
 0x97a   :  { %v4695_v35 = vpack.c.bf16 %v3652_v33, %v3651_v32  ;;  %v5476_v37 = vpack.c.bf16 %v3652_v33, %v3652_v33 }
 0x97c   :  { %4627 = vst [vmem:[%s5777_s7 + $0x50] sm:$0xff] %v4695_v35  ;;  %3909 = vmatprep.mubr.bf16.mxu1 %v5476_v37 }
 0x97d   :  { %3910 = vmatmul.mubr.bf16.vlgmr.msra.gmra.mxu1 %v5475_v36 }
 0xa3d   :  { %v3911_v51 = vpop.f32.mrf.mxu1 }
 0xa3e   :  { %v3912_v52 = vadd.f32 %v3911_v51, %v3703_v49 }
 0xa3f   :  { %v3913_v53 = vpop.f32.mrf.mxu1 }
 0xa40   :  { %v3914_v54 = vadd.f32 %v3913_v53, %v3707_v50  ;;  %v3918_v56 = vmax.f32 %v3912_v52, 0.0 }
 0xa41   :  { %v3915_v55 = vpop.f32.mrf.mxu1 }
 0xa42   :  { %v3919_v57 = vmax.f32 %v3914_v54, 0.0  ;;  %v5477_v60 = vpack.c.bf16 %v3918_v56, %v3918_v56 }
 0xa43   :  { %v3916_v58 = vpop.f32.mrf.mxu1 }
 0xa44   :  { %v4696_v59 = vpack.c.bf16 %v3919_v57, %v3918_v56  ;;  %v5478_v62 = vpack.c.bf16 %v3919_v57, %v3919_v57 }
 0xa46   :  { %4664 = vst [vmem:[%s5777_s7 + $0x58] sm:$0xff] %v4696_v59  ;;  %4105 = vmatprep.mubr.bf16.mxu0 %v5478_v62 }
 0xa47   :  { %4106 = vmatmul.mubr.bf16.vlgmr.msra.gmra.mxu0 %v5477_v60 }
 0xb07   :  { %v4713_v63 = vpop.f32.mrf.mxu0 }
 0xb09   :  { %v4714_v0 = vpop.f32.mrf.mxu0 }
 0xb0a   :  { %v4715_v3 = vadd.f32 %v4714_v0, %v4713_v63 }
 0xb0b   :  { %v4716_v4 = vpop.f32.mrf.mxu0 }
 0xb0c   :  { %v4108_v5 = vadd.f32 %v4715_v3, %v4666_v2 }
 0xb0d   :  { %v4717_v6 = vpop.f32.mrf.mxu0 }
 0xb0e   :  { %v4116_v7 = vsel %vm4115_vm0, %v4108_v5, -inf }
 0xb0f   :  { %4117 = vmax.xlane.f32.xlu0 %v4116_v7 }
 0xb98   :  { %v4118_v8 = vpop.xlane.xlu0 %4117 }
 0xb99   :  { %v4119_v9 = vsub.f32 %v4116_v7, %v4118_v8 }
 0xb9b   :  { %v4120_v10 = vmul.f32 1.442695, %v4119_v9 }
 0xb9d   :  { %5451 = vpow2.f32 %v4120_v10 }
 0xbaa   :  { %v5452_v11 = vpop.eup %5451 }
 0xbab   :  { %4122 = vadd.xlane.f32.xlu0 %v5452_v11 }
 0xc34   :  { %v4123_v12 = vpop.xlane.xlu0 %4122 }
 0xc35   :  { %5453 = vrcp.f32 %v4123_v12 }
 0xc42   :  { %v5454_v13 = vpop.eup %5453 }
 0xc43   :  { %v4125_v14 = vmul.f32 %v5454_v13, %v5452_v11 }
 0xc45   :  { %4126 = vst [vmem:[%s5778_s8] sm:$0xff] %v4125_v14 }
 0xc46   :  { %4135 = vsyncpa [#allocation3], 1 }
 0xc47   :  { %4136 = vsyncpa [#allocation5], 1 }
 0xc48   :  { %4137 = vsyncpa [#allocation8], 1 }
 0xc49   :  { %4138 = vsyncpa [#allocation11], 1 }

</bundles_post_ra>
